<compile_context>
chip_gen: v7x
topology: tpu7x:2x2x1
jax: 0.10.0
libtpu: 0.0.40
codegen_flags: <defaults>
</compile_context>

<pallas_src>
import jax
import jax.numpy as jnp
import numpy as np
from jax.experimental import pallas as pl
from jax.experimental.pallas import tpu as pltpu


def gru_genre_kernel(x_ref, h0_ref, w_i_ref, w_h_ref, b_ref,
                     wb_ac_ref, wb_hc_ref, out_ref):
    """Whole-forward kernel: GRU recurrence + attention + heads.

    x_ref   : (T*B, E)   time-major, flattened embedded sentences
    h0_ref  : (B, H)     initial hidden state
    w_i_ref : (E, 3H)    input weights, PyTorch gate order [r|z|n]
    w_h_ref : (H, 3H)    recurrent weights, gate order [r|z|n]
    b_ref   : (2, 2H)    row0 = [b_ih_r+b_hh_r | b_ih_z+b_hh_z]
                         row1 = [b_ih_n | b_hh_n]
    wb_ac_ref: (2H+1, 2H) attn_combine weight with bias stacked as last row
    wb_hc_ref: (2H+1, C)  hidden2cat weight with bias stacked as last row
    out_ref : (B, C)     log-softmax class scores
    """
    TB, E = x_ref.shape
    B, H = h0_ref.shape
    T = TB // B

    # ---- unpack consolidated operands (one-time static slices, off-path) ----
    w_i = w_i_ref[...]                                   # (E, 3H)
    w_h = w_h_ref[...]                                   # (H, 3H)
    w_ih_rz, w_ih_n = w_i[:, :2 * H], w_i[:, 2 * H:]
    w_hh_rz, w_hh_n = w_h[:, :2 * H], w_h[:, 2 * H:]
    b_rz = b_ref[0:1, :]                                 # (1, 2H) folded r/z bias
    b_in = b_ref[1:2, :H]                                # (1, H)  input n bias
    b_hn = jnp.broadcast_to(b_ref[1:2, H:], (B, H))      # hoisted broadcast

    # ---- hoisted, time-major input projection (off the serial chain) --------
    x_flat = x_ref[...]                                  # (T*B, E)
    gi_rz = (jnp.dot(x_flat, w_ih_rz, preferred_element_type=jnp.float32)
             + b_rz)                                     # (T*B, 2H)
    gi_n = (jnp.dot(x_flat, w_ih_n, preferred_element_type=jnp.float32)
            + b_in)                                      # (T*B, H)

    # ---- GRU recurrence, fully unrolled (T static), fused r/z gate ----------
    h = h0_ref[...]
    hs = []
    for t in range(T):
        lo, hi = t * B, (t + 1) * B                      # static sublane-aligned
        gh_rz = jnp.dot(h, w_hh_rz, preferred_element_type=jnp.float32)
        rz = jax.nn.sigmoid(gi_rz[lo:hi, :] + gh_rz)     # one EUP pass for r & z
        r, z = rz[:, :H], rz[:, H:]                      # lane split, same vreg
        gh_n = jnp.dot(h, w_hh_n, preferred_element_type=jnp.float32)
        n = jnp.tanh(gi_n[lo:hi, :] + r * (gh_n + b_hn))
        h = (1.0 - z) * n + z * h
        hs.append(h)                                     # model_out[:, t, :]
    h_final = h                                          # (B, H)

    # ---- attention over previous hiddens, lane-packed softmax ---------------
    prev = hs[:T - 2]                                    # list of (B, H)
    scores = jnp.concatenate(
        [jnp.sum(p * h_final, axis=-1, keepdims=True) for p in prev],
        axis=-1)                                         # (B, T-2), one vreg
    m = jnp.max(scores, axis=-1, keepdims=True)          # one lane reduce
    exps = jnp.exp(scores - m)                           # one EUP pass
    denom = jnp.sum(exps, axis=-1, keepdims=True)        # one lane reduce
    attn = exps * pl.reciprocal(denom, approx=False)     # exact: off recurrence
    context = attn[:, 0:1] * prev[0]
    for t in range(1, T - 2):
        context = context + attn[:, t:t + 1] * prev[t]   # (B, H)

    # ---- attn_combine via split matmuls (no lane concat) + hidden2cat -------
    w_ac_c = wb_ac_ref[:H, :]
    w_ac_h = wb_ac_ref[H:2 * H, :]
    b_ac = wb_ac_ref[2 * H:, :]
    combined = jnp.tanh(
        jnp.dot(context, w_ac_c, preferred_element_type=jnp.float32)
        + jnp.dot(h_final, w_ac_h, preferred_element_type=jnp.float32)
        + b_ac)                                          # (B, 2H)
    w_hc = wb_hc_ref[:2 * H, :]
    b_hc = wb_hc_ref[2 * H:, :]
    cat_space = (jnp.dot(combined, w_hc, preferred_element_type=jnp.float32)
                 + b_hc)                                 # (B, C)

    # log_softmax over classes.
    cm = jnp.max(cat_space, axis=-1, keepdims=True)
    shifted = cat_space - cm
    lse = jnp.log(jnp.sum(jnp.exp(shifted), axis=-1, keepdims=True))
    out_ref[...] = shifted - lse


def pack_params(w_ih, w_hh, b_ih, b_hh, w_ac, b_ac, w_hc, b_hc):
    """One-time weight prep, hoisted out of the per-call jitted forward."""
    H = w_hh.shape[0]
    w_i = jnp.asarray(w_ih, jnp.float32)                              # (E, 3H)
    w_h = jnp.asarray(w_hh, jnp.float32)                              # (H, 3H)
    b_rz = b_ih[:, :2 * H] + b_hh[:, :2 * H]                          # (1, 2H)
    b_n_row = jnp.concatenate([b_ih[:, 2 * H:], b_hh[:, 2 * H:]], -1)  # (1, 2H)
    b_pack = jnp.concatenate([b_rz, b_n_row], 0).astype(jnp.float32)  # (2, 2H)
    wb_ac = jnp.concatenate([w_ac, b_ac], 0).astype(jnp.float32)      # (2H+1, 2H)
    wb_hc = jnp.concatenate([w_hc, b_hc], 0).astype(jnp.float32)      # (2H+1, C)
    return w_i, w_h, b_pack, wb_ac, wb_hc


@jax.jit
def gru_genre_forward(x_btE, h0_1bh, w_i, w_h, b_pack, wb_ac, wb_hc):
    """x_btE: (B, T, E) batch-first (PyTorch convention). Returns (1, B, C)."""
    B, T, E = x_btE.shape
    H = h0_1bh.shape[-1]
    C = wb_hc.shape[-1]
    assert T > 2, "attention window model_out[:, :-2, :] must be non-empty"

    # Time-major layout for the hoisted gate projection (off-path XLA op).
    x_tm = jnp.transpose(x_btE.astype(jnp.float32), (1, 0, 2)).reshape(T * B, E)
    h0 = h0_1bh.reshape(B, H).astype(jnp.float32)

    vmem = pl.BlockSpec(memory_space=pltpu.MemorySpace.VMEM)
    out = pl.pallas_call(
        gru_genre_kernel,
        out_shape=jax.ShapeDtypeStruct((B, C), jnp.float32),
        in_specs=[vmem] * 7,
        out_specs=vmem,
    )(x_tm, h0, w_i, w_h, b_pack, wb_ac, wb_hc)
    return out.reshape(1, B, C)


def reference_forward(x_btE, h0_1bh, w_ih, w_hh, b_ih, b_hh, w_ac, b_ac, w_hc, b_hc):
    """Pure-JAX reference mirroring the PyTorch forward (fused weights)."""
    B, T, E = x_btE.shape
    H = h0_1bh.shape[-1]
    h0 = h0_1bh.reshape(B, H)

    def cell(h, x_t):
        gi = x_t @ w_ih + b_ih
        gh = h @ w_hh + b_hh
        r = jax.nn.sigmoid(gi[:, :H] + gh[:, :H])
        z = jax.nn.sigmoid(gi[:, H:2 * H] + gh[:, H:2 * H])
        n = jnp.tanh(gi[:, 2 * H:] + r * gh[:, 2 * H:])
        h_new = (1.0 - z) * n + z * h
        return h_new, h_new

    h_final, hs = jax.lax.scan(cell, h0, jnp.transpose(x_btE, (1, 0, 2)))
    prev = hs[:T - 2]                                            # (T-2, B, H)
    scores = jnp.einsum('bh,tbh->bt', h_final, prev)
    attn = jax.nn.softmax(scores, axis=-1)
    context = jnp.einsum('bt,tbh->bh', attn, prev)
    combined = jnp.tanh(jnp.concatenate([context, h_final], -1) @ w_ac + b_ac)
    cat_space = combined @ w_hc + b_hc
    return jax.nn.log_softmax(cat_space, axis=-1)[None]          # (1, B, C)


if __name__ == "__main__":
    # Module hyperparameters (small, consistent with the PyTorch __init__).
    embedding_dim = 32      # E
    hidden_dim = 32         # H
    num_cat = 8             # C
    num_sentence = 8        # B (batch of sentences)
    limit = 8               # T (word limit / sequence length)

    key = jax.random.PRNGKey(0)
    keys = jax.random.split(key, 12)
    k = 1.0 / np.sqrt(hidden_dim)

    def unif(kk, shape):
        return jax.random.uniform(kk, shape, jnp.float32, minval=-k, maxval=k)

    # GRU weights (PyTorch stores (3H, in); we pass transposed (in, 3H)).
    w_ih = unif(keys[0], (embedding_dim, 3 * hidden_dim))
    w_hh = unif(keys[1], (hidden_dim, 3 * hidden_dim))
    b_ih = unif(keys[2], (1, 3 * hidden_dim))
    b_hh = unif(keys[3], (1, 3 * hidden_dim))
    # attn_combine: Linear(2H, 2H); hidden2cat: Linear(2H, C)  (transposed).
    w_ac = unif(keys[4], (2 * hidden_dim, 2 * hidden_dim))
    b_ac = unif(keys[5], (1, 2 * hidden_dim))
    w_hc = unif(keys[6], (2 * hidden_dim, num_cat))
    b_hc = unif(keys[7], (1, num_cat))

    # Inputs: pre-embedded sentences (what prepSentences would produce) and
    # the torch.rand(1, num_sentence, hidden_dim) initial hidden state.
    x = jax.random.normal(keys[8], (num_sentence, limit, embedding_dim), jnp.float32)
    h0 = jax.random.uniform(keys[9], (1, num_sentence, hidden_dim), jnp.float32)

    # One-time weight prep (outside the jitted per-call path).
    packed = pack_params(w_ih, w_hh, b_ih, b_hh, w_ac, b_ac, w_hc, b_hc)
    packed = jax.tree_util.tree_map(jax.block_until_ready, packed)

    out = gru_genre_forward(x, h0, *packed)
    out = jax.block_until_ready(out)

    ref = reference_forward(x, h0, w_ih, w_hh, b_ih, b_hh, w_ac, b_ac, w_hc, b_hc)
    assert out.shape == (1, num_sentence, num_cat), out.shape
    np.testing.assert_allclose(np.asarray(out), np.asarray(ref), rtol=5e-2, atol=5e-2)

    print("KERNEL_OK")
</pallas_src>

<mosaic_0001>
module attributes {stable_mosaic.version = 11 : i64} {
  func.func @gru_genre_kernel(%arg0: memref<64x32xf32, #tpu.memory_space<vmem>>, %arg1: memref<8x32xf32, #tpu.memory_space<vmem>>, %arg2: memref<32x96xf32, #tpu.memory_space<vmem>>, %arg3: memref<32x96xf32, #tpu.memory_space<vmem>>, %arg4: memref<2x64xf32, #tpu.memory_space<vmem>>, %arg5: memref<65x64xf32, #tpu.memory_space<vmem>>, %arg6: memref<65x8xf32, #tpu.memory_space<vmem>>, %arg7: memref<8x8xf32, #tpu.memory_space<vmem>>) attributes {dimension_semantics = [], scalar_prefetch = 0 : i64, scratch_operands = 0 : i64, tpu.core_type = #tpu.core_type<tc>} {
    %c0 = arith.constant 0 : index
    %c0_0 = arith.constant 0 : index
    %0 = vector.load %arg2[%c0, %c0_0] : memref<32x96xf32, #tpu.memory_space<vmem>>, vector<32x96xf32>
    %c0_1 = arith.constant 0 : index
    %c0_2 = arith.constant 0 : index
    %1 = vector.load %arg3[%c0_1, %c0_2] : memref<32x96xf32, #tpu.memory_space<vmem>>, vector<32x96xf32>
    %2 = vector.extract_strided_slice %0 {offsets = [0, 0], sizes = [32, 64], strides = [1, 1]} : vector<32x96xf32> to vector<32x64xf32>
    %3 = vector.extract_strided_slice %0 {offsets = [0, 64], sizes = [32, 32], strides = [1, 1]} : vector<32x96xf32> to vector<32x32xf32>
    %4 = vector.extract_strided_slice %1 {offsets = [0, 0], sizes = [32, 64], strides = [1, 1]} : vector<32x96xf32> to vector<32x64xf32>
    %5 = vector.extract_strided_slice %1 {offsets = [0, 64], sizes = [32, 32], strides = [1, 1]} : vector<32x96xf32> to vector<32x32xf32>
    %c0_3 = arith.constant 0 : index
    %c0_4 = arith.constant 0 : index
    %6 = vector.load %arg4[%c0_3, %c0_4] : memref<2x64xf32, #tpu.memory_space<vmem>>, vector<1x64xf32>
    %c1 = arith.constant 1 : index
    %c0_5 = arith.constant 0 : index
    %7 = vector.load %arg4[%c1, %c0_5] : memref<2x64xf32, #tpu.memory_space<vmem>>, vector<1x32xf32>
    %c1_6 = arith.constant 1 : index
    %c32 = arith.constant 32 : index
    %8 = vector.load %arg4[%c1_6, %c32] : memref<2x64xf32, #tpu.memory_space<vmem>>, vector<1x32xf32>
    %9 = vector.shape_cast %8 : vector<1x32xf32> to vector<1x32xf32>
    %10 = vector.broadcast %9 : vector<1x32xf32> to vector<8x32xf32>
    %c0_7 = arith.constant 0 : index
    %c0_8 = arith.constant 0 : index
    %11 = vector.load %arg0[%c0_7, %c0_8] : memref<64x32xf32, #tpu.memory_space<vmem>>, vector<64x32xf32>
    %cst = arith.constant dense<0.000000e+00> : vector<64x64xf32>
    %12 = tpu.matmul %11, %2, %cst {dimension_numbers = #tpu.dot_dimension_numbers<[1], [0], [0], [1], [0, 0, 1, 1], [], []>} : vector<64x32xf32>, vector<32x64xf32>, vector<64x64xf32> -> vector<64x64xf32>
    %13 = vector.broadcast %6 : vector<1x64xf32> to vector<64x64xf32>
    %14 = arith.addf %12, %13 : vector<64x64xf32>
    %cst_9 = arith.constant dense<0.000000e+00> : vector<64x32xf32>
    %15 = tpu.matmul %11, %3, %cst_9 {dimension_numbers = #tpu.dot_dimension_numbers<[1], [0], [0], [1], [0, 0, 1, 1], [], []>} : vector<64x32xf32>, vector<32x32xf32>, vector<64x32xf32> -> vector<64x32xf32>
    %16 = vector.broadcast %7 : vector<1x32xf32> to vector<64x32xf32>
    %17 = arith.addf %15, %16 : vector<64x32xf32>
    %c0_10 = arith.constant 0 : index
    %c0_11 = arith.constant 0 : index
    %18 = vector.load %arg1[%c0_10, %c0_11] : memref<8x32xf32, #tpu.memory_space<vmem>>, vector<8x32xf32>
    %cst_12 = arith.constant dense<0.000000e+00> : vector<8x64xf32>
    %19 = tpu.matmul %18, %4, %cst_12 {dimension_numbers = #tpu.dot_dimension_numbers<[1], [0], [0], [1], [0, 0, 1, 1], [], []>} : vector<8x32xf32>, vector<32x64xf32>, vector<8x64xf32> -> vector<8x64xf32>
    %20 = vector.extract_strided_slice %14 {offsets = [0, 0], sizes = [8, 64], strides = [1, 1]} : vector<64x64xf32> to vector<8x64xf32>
    %21 = arith.addf %20, %19 : vector<8x64xf32>
    %22 = arith.negf %21 : vector<8x64xf32>
    %23 = math.exp %22 : vector<8x64xf32>
    %cst_13 = arith.constant 1.000000e+00 : f32
    %24 = vector.broadcast %cst_13 : f32 to vector<8x64xf32>
    %25 = arith.addf %24, %23 : vector<8x64xf32>
    %26 = arith.divf %24, %25 : vector<8x64xf32>
    %27 = vector.extract_strided_slice %26 {offsets = [0, 0], sizes = [8, 32], strides = [1, 1]} : vector<8x64xf32> to vector<8x32xf32>
    %28 = vector.extract_strided_slice %26 {offsets = [0, 32], sizes = [8, 32], strides = [1, 1]} : vector<8x64xf32> to vector<8x32xf32>
    %cst_14 = arith.constant dense<0.000000e+00> : vector<8x32xf32>
    %29 = tpu.matmul %18, %5, %cst_14 {dimension_numbers = #tpu.dot_dimension_numbers<[1], [0], [0], [1], [0, 0, 1, 1], [], []>} : vector<8x32xf32>, vector<32x32xf32>, vector<8x32xf32> -> vector<8x32xf32>
    %30 = vector.extract_strided_slice %17 {offsets = [0, 0], sizes = [8, 32], strides = [1, 1]} : vector<64x32xf32> to vector<8x32xf32>
    %31 = arith.addf %29, %10 : vector<8x32xf32>
    %32 = arith.mulf %27, %31 : vector<8x32xf32>
    %33 = arith.addf %30, %32 : vector<8x32xf32>
    %34 = math.tanh %33 : vector<8x32xf32>
    %cst_15 = arith.constant 1.000000e+00 : f32
    %35 = vector.broadcast %cst_15 : f32 to vector<8x32xf32>
    %36 = arith.subf %35, %28 : vector<8x32xf32>
    %37 = arith.mulf %36, %34 : vector<8x32xf32>
    %38 = arith.mulf %28, %18 : vector<8x32xf32>
    %39 = arith.addf %37, %38 : vector<8x32xf32>
    %cst_16 = arith.constant dense<0.000000e+00> : vector<8x64xf32>
    %40 = tpu.matmul %39, %4, %cst_16 {dimension_numbers = #tpu.dot_dimension_numbers<[1], [0], [0], [1], [0, 0, 1, 1], [], []>} : vector<8x32xf32>, vector<32x64xf32>, vector<8x64xf32> -> vector<8x64xf32>
    %41 = vector.extract_strided_slice %14 {offsets = [8, 0], sizes = [8, 64], strides = [1, 1]} : vector<64x64xf32> to vector<8x64xf32>
    %42 = arith.addf %41, %40 : vector<8x64xf32>
    %43 = arith.negf %42 : vector<8x64xf32>
    %44 = math.exp %43 : vector<8x64xf32>
    %cst_17 = arith.constant 1.000000e+00 : f32
    %45 = vector.broadcast %cst_17 : f32 to vector<8x64xf32>
    %46 = arith.addf %45, %44 : vector<8x64xf32>
    %47 = arith.divf %45, %46 : vector<8x64xf32>
    %48 = vector.extract_strided_slice %47 {offsets = [0, 0], sizes = [8, 32], strides = [1, 1]} : vector<8x64xf32> to vector<8x32xf32>
    %49 = vector.extract_strided_slice %47 {offsets = [0, 32], sizes = [8, 32], strides = [1, 1]} : vector<8x64xf32> to vector<8x32xf32>
    %cst_18 = arith.constant dense<0.000000e+00> : vector<8x32xf32>
    %50 = tpu.matmul %39, %5, %cst_18 {dimension_numbers = #tpu.dot_dimension_numbers<[1], [0], [0], [1], [0, 0, 1, 1], [], []>} : vector<8x32xf32>, vector<32x32xf32>, vector<8x32xf32> -> vector<8x32xf32>
    %51 = vector.extract_strided_slice %17 {offsets = [8, 0], sizes = [8, 32], strides = [1, 1]} : vector<64x32xf32> to vector<8x32xf32>
    %52 = arith.addf %50, %10 : vector<8x32xf32>
    %53 = arith.mulf %48, %52 : vector<8x32xf32>
    %54 = arith.addf %51, %53 : vector<8x32xf32>
    %55 = math.tanh %54 : vector<8x32xf32>
    %cst_19 = arith.constant 1.000000e+00 : f32
    %56 = vector.broadcast %cst_19 : f32 to vector<8x32xf32>
    %57 = arith.subf %56, %49 : vector<8x32xf32>
    %58 = arith.mulf %57, %55 : vector<8x32xf32>
    %59 = arith.mulf %49, %39 : vector<8x32xf32>
    %60 = arith.addf %58, %59 : vector<8x32xf32>
    %cst_20 = arith.constant dense<0.000000e+00> : vector<8x64xf32>
    %61 = tpu.matmul %60, %4, %cst_20 {dimension_numbers = #tpu.dot_dimension_numbers<[1], [0], [0], [1], [0, 0, 1, 1], [], []>} : vector<8x32xf32>, vector<32x64xf32>, vector<8x64xf32> -> vector<8x64xf32>
    %62 = vector.extract_strided_slice %14 {offsets = [16, 0], sizes = [8, 64], strides = [1, 1]} : vector<64x64xf32> to vector<8x64xf32>
    %63 = arith.addf %62, %61 : vector<8x64xf32>
    %64 = arith.negf %63 : vector<8x64xf32>
    %65 = math.exp %64 : vector<8x64xf32>
    %cst_21 = arith.constant 1.000000e+00 : f32
    %66 = vector.broadcast %cst_21 : f32 to vector<8x64xf32>
    %67 = arith.addf %66, %65 : vector<8x64xf32>
    %68 = arith.divf %66, %67 : vector<8x64xf32>
    %69 = vector.extract_strided_slice %68 {offsets = [0, 0], sizes = [8, 32], strides = [1, 1]} : vector<8x64xf32> to vector<8x32xf32>
    %70 = vector.extract_strided_slice %68 {offsets = [0, 32], sizes = [8, 32], strides = [1, 1]} : vector<8x64xf32> to vector<8x32xf32>
    %cst_22 = arith.constant dense<0.000000e+00> : vector<8x32xf32>
    %71 = tpu.matmul %60, %5, %cst_22 {dimension_numbers = #tpu.dot_dimension_numbers<[1], [0], [0], [1], [0, 0, 1, 1], [], []>} : vector<8x32xf32>, vector<32x32xf32>, vector<8x32xf32> -> vector<8x32xf32>
    %72 = vector.extract_strided_slice %17 {offsets = [16, 0], sizes = [8, 32], strides = [1, 1]} : vector<64x32xf32> to vector<8x32xf32>
    %73 = arith.addf %71, %10 : vector<8x32xf32>
    %74 = arith.mulf %69, %73 : vector<8x32xf32>
    %75 = arith.addf %72, %74 : vector<8x32xf32>
    %76 = math.tanh %75 : vector<8x32xf32>
    %cst_23 = arith.constant 1.000000e+00 : f32
    %77 = vector.broadcast %cst_23 : f32 to vector<8x32xf32>
    %78 = arith.subf %77, %70 : vector<8x32xf32>
    %79 = arith.mulf %78, %76 : vector<8x32xf32>
    %80 = arith.mulf %70, %60 : vector<8x32xf32>
    %81 = arith.addf %79, %80 : vector<8x32xf32>
    %cst_24 = arith.constant dense<0.000000e+00> : vector<8x64xf32>
    %82 = tpu.matmul %81, %4, %cst_24 {dimension_numbers = #tpu.dot_dimension_numbers<[1], [0], [0], [1], [0, 0, 1, 1], [], []>} : vector<8x32xf32>, vector<32x64xf32>, vector<8x64xf32> -> vector<8x64xf32>
    %83 = vector.extract_strided_slice %14 {offsets = [24, 0], sizes = [8, 64], strides = [1, 1]} : vector<64x64xf32> to vector<8x64xf32>
    %84 = arith.addf %83, %82 : vector<8x64xf32>
    %85 = arith.negf %84 : vector<8x64xf32>
    %86 = math.exp %85 : vector<8x64xf32>
    %cst_25 = arith.constant 1.000000e+00 : f32
    %87 = vector.broadcast %cst_25 : f32 to vector<8x64xf32>
    %88 = arith.addf %87, %86 : vector<8x64xf32>
    %89 = arith.divf %87, %88 : vector<8x64xf32>
    %90 = vector.extract_strided_slice %89 {offsets = [0, 0], sizes = [8, 32], strides = [1, 1]} : vector<8x64xf32> to vector<8x32xf32>
    %91 = vector.extract_strided_slice %89 {offsets = [0, 32], sizes = [8, 32], strides = [1, 1]} : vector<8x64xf32> to vector<8x32xf32>
    %cst_26 = arith.constant dense<0.000000e+00> : vector<8x32xf32>
    %92 = tpu.matmul %81, %5, %cst_26 {dimension_numbers = #tpu.dot_dimension_numbers<[1], [0], [0], [1], [0, 0, 1, 1], [], []>} : vector<8x32xf32>, vector<32x32xf32>, vector<8x32xf32> -> vector<8x32xf32>
    %93 = vector.extract_strided_slice %17 {offsets = [24, 0], sizes = [8, 32], strides = [1, 1]} : vector<64x32xf32> to vector<8x32xf32>
    %94 = arith.addf %92, %10 : vector<8x32xf32>
    %95 = arith.mulf %90, %94 : vector<8x32xf32>
    %96 = arith.addf %93, %95 : vector<8x32xf32>
    %97 = math.tanh %96 : vector<8x32xf32>
    %cst_27 = arith.constant 1.000000e+00 : f32
    %98 = vector.broadcast %cst_27 : f32 to vector<8x32xf32>
    %99 = arith.subf %98, %91 : vector<8x32xf32>
    %100 = arith.mulf %99, %97 : vector<8x32xf32>
    %101 = arith.mulf %91, %81 : vector<8x32xf32>
    %102 = arith.addf %100, %101 : vector<8x32xf32>
    %cst_28 = arith.constant dense<0.000000e+00> : vector<8x64xf32>
    %103 = tpu.matmul %102, %4, %cst_28 {dimension_numbers = #tpu.dot_dimension_numbers<[1], [0], [0], [1], [0, 0, 1, 1], [], []>} : vector<8x32xf32>, vector<32x64xf32>, vector<8x64xf32> -> vector<8x64xf32>
    %104 = vector.extract_strided_slice %14 {offsets = [32, 0], sizes = [8, 64], strides = [1, 1]} : vector<64x64xf32> to vector<8x64xf32>
    %105 = arith.addf %104, %103 : vector<8x64xf32>
    %106 = arith.negf %105 : vector<8x64xf32>
    %107 = math.exp %106 : vector<8x64xf32>
    %cst_29 = arith.constant 1.000000e+00 : f32
    %108 = vector.broadcast %cst_29 : f32 to vector<8x64xf32>
    %109 = arith.addf %108, %107 : vector<8x64xf32>
    %110 = arith.divf %108, %109 : vector<8x64xf32>
    %111 = vector.extract_strided_slice %110 {offsets = [0, 0], sizes = [8, 32], strides = [1, 1]} : vector<8x64xf32> to vector<8x32xf32>
    %112 = vector.extract_strided_slice %110 {offsets = [0, 32], sizes = [8, 32], strides = [1, 1]} : vector<8x64xf32> to vector<8x32xf32>
    %cst_30 = arith.constant dense<0.000000e+00> : vector<8x32xf32>
    %113 = tpu.matmul %102, %5, %cst_30 {dimension_numbers = #tpu.dot_dimension_numbers<[1], [0], [0], [1], [0, 0, 1, 1], [], []>} : vector<8x32xf32>, vector<32x32xf32>, vector<8x32xf32> -> vector<8x32xf32>
    %114 = vector.extract_strided_slice %17 {offsets = [32, 0], sizes = [8, 32], strides = [1, 1]} : vector<64x32xf32> to vector<8x32xf32>
    %115 = arith.addf %113, %10 : vector<8x32xf32>
    %116 = arith.mulf %111, %115 : vector<8x32xf32>
    %117 = arith.addf %114, %116 : vector<8x32xf32>
    %118 = math.tanh %117 : vector<8x32xf32>
    %cst_31 = arith.constant 1.000000e+00 : f32
    %119 = vector.broadcast %cst_31 : f32 to vector<8x32xf32>
    %120 = arith.subf %119, %112 : vector<8x32xf32>
    %121 = arith.mulf %120, %118 : vector<8x32xf32>
    %122 = arith.mulf %112, %102 : vector<8x32xf32>
    %123 = arith.addf %121, %122 : vector<8x32xf32>
    %cst_32 = arith.constant dense<0.000000e+00> : vector<8x64xf32>
    %124 = tpu.matmul %123, %4, %cst_32 {dimension_numbers = #tpu.dot_dimension_numbers<[1], [0], [0], [1], [0, 0, 1, 1], [], []>} : vector<8x32xf32>, vector<32x64xf32>, vector<8x64xf32> -> vector<8x64xf32>
    %125 = vector.extract_strided_slice %14 {offsets = [40, 0], sizes = [8, 64], strides = [1, 1]} : vector<64x64xf32> to vector<8x64xf32>
    %126 = arith.addf %125, %124 : vector<8x64xf32>
    %127 = arith.negf %126 : vector<8x64xf32>
    %128 = math.exp %127 : vector<8x64xf32>
    %cst_33 = arith.constant 1.000000e+00 : f32
    %129 = vector.broadcast %cst_33 : f32 to vector<8x64xf32>
    %130 = arith.addf %129, %128 : vector<8x64xf32>
    %131 = arith.divf %129, %130 : vector<8x64xf32>
    %132 = vector.extract_strided_slice %131 {offsets = [0, 0], sizes = [8, 32], strides = [1, 1]} : vector<8x64xf32> to vector<8x32xf32>
    %133 = vector.extract_strided_slice %131 {offsets = [0, 32], sizes = [8, 32], strides = [1, 1]} : vector<8x64xf32> to vector<8x32xf32>
    %cst_34 = arith.constant dense<0.000000e+00> : vector<8x32xf32>
    %134 = tpu.matmul %123, %5, %cst_34 {dimension_numbers = #tpu.dot_dimension_numbers<[1], [0], [0], [1], [0, 0, 1, 1], [], []>} : vector<8x32xf32>, vector<32x32xf32>, vector<8x32xf32> -> vector<8x32xf32>
    %135 = vector.extract_strided_slice %17 {offsets = [40, 0], sizes = [8, 32], strides = [1, 1]} : vector<64x32xf32> to vector<8x32xf32>
    %136 = arith.addf %134, %10 : vector<8x32xf32>
    %137 = arith.mulf %132, %136 : vector<8x32xf32>
    %138 = arith.addf %135, %137 : vector<8x32xf32>
    %139 = math.tanh %138 : vector<8x32xf32>
    %cst_35 = arith.constant 1.000000e+00 : f32
    %140 = vector.broadcast %cst_35 : f32 to vector<8x32xf32>
    %141 = arith.subf %140, %133 : vector<8x32xf32>
    %142 = arith.mulf %141, %139 : vector<8x32xf32>
    %143 = arith.mulf %133, %123 : vector<8x32xf32>
    %144 = arith.addf %142, %143 : vector<8x32xf32>
    %cst_36 = arith.constant dense<0.000000e+00> : vector<8x64xf32>
    %145 = tpu.matmul %144, %4, %cst_36 {dimension_numbers = #tpu.dot_dimension_numbers<[1], [0], [0], [1], [0, 0, 1, 1], [], []>} : vector<8x32xf32>, vector<32x64xf32>, vector<8x64xf32> -> vector<8x64xf32>
    %146 = vector.extract_strided_slice %14 {offsets = [48, 0], sizes = [8, 64], strides = [1, 1]} : vector<64x64xf32> to vector<8x64xf32>
    %147 = arith.addf %146, %145 : vector<8x64xf32>
    %148 = arith.negf %147 : vector<8x64xf32>
    %149 = math.exp %148 : vector<8x64xf32>
    %cst_37 = arith.constant 1.000000e+00 : f32
    %150 = vector.broadcast %cst_37 : f32 to vector<8x64xf32>
    %151 = arith.addf %150, %149 : vector<8x64xf32>
    %152 = arith.divf %150, %151 : vector<8x64xf32>
    %153 = vector.extract_strided_slice %152 {offsets = [0, 0], sizes = [8, 32], strides = [1, 1]} : vector<8x64xf32> to vector<8x32xf32>
    %154 = vector.extract_strided_slice %152 {offsets = [0, 32], sizes = [8, 32], strides = [1, 1]} : vector<8x64xf32> to vector<8x32xf32>
    %cst_38 = arith.constant dense<0.000000e+00> : vector<8x32xf32>
    %155 = tpu.matmul %144, %5, %cst_38 {dimension_numbers = #tpu.dot_dimension_numbers<[1], [0], [0], [1], [0, 0, 1, 1], [], []>} : vector<8x32xf32>, vector<32x32xf32>, vector<8x32xf32> -> vector<8x32xf32>
    %156 = vector.extract_strided_slice %17 {offsets = [48, 0], sizes = [8, 32], strides = [1, 1]} : vector<64x32xf32> to vector<8x32xf32>
    %157 = arith.addf %155, %10 : vector<8x32xf32>
    %158 = arith.mulf %153, %157 : vector<8x32xf32>
    %159 = arith.addf %156, %158 : vector<8x32xf32>
    %160 = math.tanh %159 : vector<8x32xf32>
    %cst_39 = arith.constant 1.000000e+00 : f32
    %161 = vector.broadcast %cst_39 : f32 to vector<8x32xf32>
    %162 = arith.subf %161, %154 : vector<8x32xf32>
    %163 = arith.mulf %162, %160 : vector<8x32xf32>
    %164 = arith.mulf %154, %144 : vector<8x32xf32>
    %165 = arith.addf %163, %164 : vector<8x32xf32>
    %cst_40 = arith.constant dense<0.000000e+00> : vector<8x64xf32>
    %166 = tpu.matmul %165, %4, %cst_40 {dimension_numbers = #tpu.dot_dimension_numbers<[1], [0], [0], [1], [0, 0, 1, 1], [], []>} : vector<8x32xf32>, vector<32x64xf32>, vector<8x64xf32> -> vector<8x64xf32>
    %167 = vector.extract_strided_slice %14 {offsets = [56, 0], sizes = [8, 64], strides = [1, 1]} : vector<64x64xf32> to vector<8x64xf32>
    %168 = arith.addf %167, %166 : vector<8x64xf32>
    %169 = arith.negf %168 : vector<8x64xf32>
    %170 = math.exp %169 : vector<8x64xf32>
    %cst_41 = arith.constant 1.000000e+00 : f32
    %171 = vector.broadcast %cst_41 : f32 to vector<8x64xf32>
    %172 = arith.addf %171, %170 : vector<8x64xf32>
    %173 = arith.divf %171, %172 : vector<8x64xf32>
    %174 = vector.extract_strided_slice %173 {offsets = [0, 0], sizes = [8, 32], strides = [1, 1]} : vector<8x64xf32> to vector<8x32xf32>
    %175 = vector.extract_strided_slice %173 {offsets = [0, 32], sizes = [8, 32], strides = [1, 1]} : vector<8x64xf32> to vector<8x32xf32>
    %cst_42 = arith.constant dense<0.000000e+00> : vector<8x32xf32>
    %176 = tpu.matmul %165, %5, %cst_42 {dimension_numbers = #tpu.dot_dimension_numbers<[1], [0], [0], [1], [0, 0, 1, 1], [], []>} : vector<8x32xf32>, vector<32x32xf32>, vector<8x32xf32> -> vector<8x32xf32>
    %177 = vector.extract_strided_slice %17 {offsets = [56, 0], sizes = [8, 32], strides = [1, 1]} : vector<64x32xf32> to vector<8x32xf32>
    %178 = arith.addf %176, %10 : vector<8x32xf32>
    %179 = arith.mulf %174, %178 : vector<8x32xf32>
    %180 = arith.addf %177, %179 : vector<8x32xf32>
    %181 = math.tanh %180 : vector<8x32xf32>
    %cst_43 = arith.constant 1.000000e+00 : f32
    %182 = vector.broadcast %cst_43 : f32 to vector<8x32xf32>
    %183 = arith.subf %182, %175 : vector<8x32xf32>
    %184 = arith.mulf %183, %181 : vector<8x32xf32>
    %185 = arith.mulf %175, %165 : vector<8x32xf32>
    %186 = arith.addf %184, %185 : vector<8x32xf32>
    %187 = arith.mulf %39, %186 : vector<8x32xf32>
    %cst_44 = arith.constant dense<0.000000e+00> : vector<8xf32>
    %188 = vector.multi_reduction <add>, %187, %cst_44 [1] : vector<8x32xf32> to vector<8xf32>
    %189 = vector.shape_cast %188 : vector<8xf32> to vector<8x1xf32>
    %190 = arith.mulf %60, %186 : vector<8x32xf32>
    %cst_45 = arith.constant dense<0.000000e+00> : vector<8xf32>
    %191 = vector.multi_reduction <add>, %190, %cst_45 [1] : vector<8x32xf32> to vector<8xf32>
    %192 = vector.shape_cast %191 : vector<8xf32> to vector<8x1xf32>
    %193 = arith.mulf %81, %186 : vector<8x32xf32>
    %cst_46 = arith.constant dense<0.000000e+00> : vector<8xf32>
    %194 = vector.multi_reduction <add>, %193, %cst_46 [1] : vector<8x32xf32> to vector<8xf32>
    %195 = vector.shape_cast %194 : vector<8xf32> to vector<8x1xf32>
    %196 = arith.mulf %102, %186 : vector<8x32xf32>
    %cst_47 = arith.constant dense<0.000000e+00> : vector<8xf32>
    %197 = vector.multi_reduction <add>, %196, %cst_47 [1] : vector<8x32xf32> to vector<8xf32>
    %198 = vector.shape_cast %197 : vector<8xf32> to vector<8x1xf32>
    %199 = arith.mulf %123, %186 : vector<8x32xf32>
    %cst_48 = arith.constant dense<0.000000e+00> : vector<8xf32>
    %200 = vector.multi_reduction <add>, %199, %cst_48 [1] : vector<8x32xf32> to vector<8xf32>
    %201 = vector.shape_cast %200 : vector<8xf32> to vector<8x1xf32>
    %202 = arith.mulf %144, %186 : vector<8x32xf32>
    %cst_49 = arith.constant dense<0.000000e+00> : vector<8xf32>
    %203 = vector.multi_reduction <add>, %202, %cst_49 [1] : vector<8x32xf32> to vector<8xf32>
    %204 = vector.shape_cast %203 : vector<8xf32> to vector<8x1xf32>
    %205 = tpu.concatenate %189, %192, %195, %198, %201, %204 in 1 : vector<8x1xf32>, vector<8x1xf32>, vector<8x1xf32>, vector<8x1xf32>, vector<8x1xf32>, vector<8x1xf32> -> vector<8x6xf32>
    %cst_50 = arith.constant dense<0xFF800000> : vector<8xf32>
    %206 = vector.multi_reduction <maximumf>, %205, %cst_50 [1] : vector<8x6xf32> to vector<8xf32>
    %207 = vector.shape_cast %206 : vector<8xf32> to vector<8x1xf32>
    %208 = vector.broadcast %207 : vector<8x1xf32> to vector<8x6xf32>
    %209 = arith.subf %205, %208 : vector<8x6xf32>
    %210 = math.exp %209 : vector<8x6xf32>
    %cst_51 = arith.constant dense<0.000000e+00> : vector<8xf32>
    %211 = vector.multi_reduction <add>, %210, %cst_51 [1] : vector<8x6xf32> to vector<8xf32>
    %212 = vector.shape_cast %211 : vector<8xf32> to vector<8x1xf32>
    %213 = tpu.reciprocal %212 : vector<8x1xf32> -> vector<8x1xf32>
    %214 = vector.broadcast %213 : vector<8x1xf32> to vector<8x6xf32>
    %215 = arith.mulf %210, %214 : vector<8x6xf32>
    %216 = vector.extract_strided_slice %215 {offsets = [0, 0], sizes = [8, 1], strides = [1, 1]} : vector<8x6xf32> to vector<8x1xf32>
    %217 = vector.broadcast %216 : vector<8x1xf32> to vector<8x32xf32>
    %218 = arith.mulf %217, %39 : vector<8x32xf32>
    %219 = vector.extract_strided_slice %215 {offsets = [0, 1], sizes = [8, 1], strides = [1, 1]} : vector<8x6xf32> to vector<8x1xf32>
    %220 = vector.broadcast %219 : vector<8x1xf32> to vector<8x32xf32>
    %221 = arith.mulf %220, %60 : vector<8x32xf32>
    %222 = arith.addf %218, %221 : vector<8x32xf32>
    %223 = vector.extract_strided_slice %215 {offsets = [0, 2], sizes = [8, 1], strides = [1, 1]} : vector<8x6xf32> to vector<8x1xf32>
    %224 = vector.broadcast %223 : vector<8x1xf32> to vector<8x32xf32>
    %225 = arith.mulf %224, %81 : vector<8x32xf32>
    %226 = arith.addf %222, %225 : vector<8x32xf32>
    %227 = vector.extract_strided_slice %215 {offsets = [0, 3], sizes = [8, 1], strides = [1, 1]} : vector<8x6xf32> to vector<8x1xf32>
    %228 = vector.broadcast %227 : vector<8x1xf32> to vector<8x32xf32>
    %229 = arith.mulf %228, %102 : vector<8x32xf32>
    %230 = arith.addf %226, %229 : vector<8x32xf32>
    %231 = vector.extract_strided_slice %215 {offsets = [0, 4], sizes = [8, 1], strides = [1, 1]} : vector<8x6xf32> to vector<8x1xf32>
    %232 = vector.broadcast %231 : vector<8x1xf32> to vector<8x32xf32>
    %233 = arith.mulf %232, %123 : vector<8x32xf32>
    %234 = arith.addf %230, %233 : vector<8x32xf32>
    %235 = vector.extract_strided_slice %215 {offsets = [0, 5], sizes = [8, 1], strides = [1, 1]} : vector<8x6xf32> to vector<8x1xf32>
    %236 = vector.broadcast %235 : vector<8x1xf32> to vector<8x32xf32>
    %237 = arith.mulf %236, %144 : vector<8x32xf32>
    %238 = arith.addf %234, %237 : vector<8x32xf32>
    %c0_52 = arith.constant 0 : index
    %c0_53 = arith.constant 0 : index
    %239 = vector.load %arg5[%c0_52, %c0_53] : memref<65x64xf32, #tpu.memory_space<vmem>>, vector<32x64xf32>
    %c32_54 = arith.constant 32 : index
    %c0_55 = arith.constant 0 : index
    %240 = vector.load %arg5[%c32_54, %c0_55] : memref<65x64xf32, #tpu.memory_space<vmem>>, vector<32x64xf32>
    %c64 = arith.constant 64 : index
    %c0_56 = arith.constant 0 : index
    %241 = vector.load %arg5[%c64, %c0_56] : memref<65x64xf32, #tpu.memory_space<vmem>>, vector<1x64xf32>
    %cst_57 = arith.constant dense<0.000000e+00> : vector<8x64xf32>
    %242 = tpu.matmul %238, %239, %cst_57 {dimension_numbers = #tpu.dot_dimension_numbers<[1], [0], [0], [1], [0, 0, 1, 1], [], []>} : vector<8x32xf32>, vector<32x64xf32>, vector<8x64xf32> -> vector<8x64xf32>
    %cst_58 = arith.constant dense<0.000000e+00> : vector<8x64xf32>
    %243 = tpu.matmul %186, %240, %cst_58 {dimension_numbers = #tpu.dot_dimension_numbers<[1], [0], [0], [1], [0, 0, 1, 1], [], []>} : vector<8x32xf32>, vector<32x64xf32>, vector<8x64xf32> -> vector<8x64xf32>
    %244 = arith.addf %242, %243 : vector<8x64xf32>
    %245 = vector.broadcast %241 : vector<1x64xf32> to vector<8x64xf32>
    %246 = arith.addf %244, %245 : vector<8x64xf32>
    %247 = math.tanh %246 : vector<8x64xf32>
    %c0_59 = arith.constant 0 : index
    %c0_60 = arith.constant 0 : index
    %248 = vector.load %arg6[%c0_59, %c0_60] : memref<65x8xf32, #tpu.memory_space<vmem>>, vector<64x8xf32>
    %c64_61 = arith.constant 64 : index
    %c0_62 = arith.constant 0 : index
    %249 = vector.load %arg6[%c64_61, %c0_62] : memref<65x8xf32, #tpu.memory_space<vmem>>, vector<1x8xf32>
    %cst_63 = arith.constant dense<0.000000e+00> : vector<8x8xf32>
    %250 = tpu.matmul %247, %248, %cst_63 {dimension_numbers = #tpu.dot_dimension_numbers<[1], [0], [0], [1], [0, 0, 1, 1], [], []>} : vector<8x64xf32>, vector<64x8xf32>, vector<8x8xf32> -> vector<8x8xf32>
    %251 = vector.broadcast %249 : vector<1x8xf32> to vector<8x8xf32>
    %252 = arith.addf %250, %251 : vector<8x8xf32>
    %cst_64 = arith.constant dense<0xFF800000> : vector<8xf32>
    %253 = vector.multi_reduction <maximumf>, %252, %cst_64 [1] : vector<8x8xf32> to vector<8xf32>
    %254 = vector.shape_cast %253 : vector<8xf32> to vector<8x1xf32>
    %255 = vector.broadcast %254 : vector<8x1xf32> to vector<8x8xf32>
    %256 = arith.subf %252, %255 : vector<8x8xf32>
    %257 = math.exp %256 : vector<8x8xf32>
    %cst_65 = arith.constant dense<0.000000e+00> : vector<8xf32>
    %258 = vector.multi_reduction <add>, %257, %cst_65 [1] : vector<8x8xf32> to vector<8xf32>
    %259 = vector.shape_cast %258 : vector<8xf32> to vector<8x1xf32>
    %260 = math.log %259 : vector<8x1xf32>
    %261 = vector.broadcast %260 : vector<8x1xf32> to vector<8x8xf32>
    %262 = arith.subf %256, %261 : vector<8x8xf32>
    %c0_66 = arith.constant 0 : index
    %c0_67 = arith.constant 0 : index
    %263 = vector.load %arg7[%c0_66, %c0_67] : memref<8x8xf32, #tpu.memory_space<vmem>>, vector<8x8xf32>
    tpu.vector_store %arg7[%c0_66, %c0_67], %262 {strides = array<i32>} : memref<8x8xf32, #tpu.memory_space<vmem>>, vector<8x8xf32>,
    return
  }
}

</mosaic_0001>

<bundles_post_ra>
// kernel: gru_genre_forward.1
= control target key start
LH: loop header
LB: loop body
LE: loop exit
PB: predicated region body
PF: predicated region fallthrough
CT: control target
= control target key end

     0   :  { %vm53_vm0 = vcmask 261120   ;;  %s2705_s18 = smov 64   ;;  %s3176_s0 = inlined_call_operand.vmem [shape: f32[64,32], index: 0, kind: input, shape index: {}]   ;;  %s3177_s1 = inlined_call_operand.vmem [shape: f32[8,32], index: 1, kind: input, shape index: {}]   ;;  %s3178_s2 = inlined_call_operand.vmem [shape: f32[32,96], index: 2, kind: input, shape index: {}]   ;;  %s3179_s3 = inlined_call_operand.vmem [shape: f32[32,96], index: 3, kind: input, shape index: {}]   ;;  %s3180_s4 = inlined_call_operand.vmem [shape: f32[2,64], index: 4, kind: input, shape index: {}]   ;;  %s3181_s5 = inlined_call_operand.vmem [shape: f32[65,64], index: 5, kind: input, shape index: {}]   ;;  %s3182_s6 = inlined_call_operand.vmem [shape: f32[65,8], index: 6, kind: input, shape index: {}]   ;;  %s3183_s7 = inlined_call_operand.hbm [shape: f32[8,8], index: 7, kind: output, shape index: {}]  }
   0x1   :  { %v27_v0 = vld [vmem:[%s3178_s2] sm:$0xff]  ;;  %v28_v1 = vld [vmem:[%s3178_s2 + $0x8] sm:$0xff]  ;;  %v29_v2 = vld [vmem:[%s3178_s2 + $0x10] sm:$0xff] }
   0x2   :  { %v2596_v3 = vpack.i.bf16 %v28_v1, %v27_v0  ;;  %v2443_v4 = vpack.c.bf16 %v28_v1, %v27_v0  ;;  %v30_v5 = vld [vmem:[%s3178_s2 + $0x18] sm:$0xff]  ;;  %v31_v6 = vld [vmem:[%s3179_s3] sm:$0xff]  ;;  %v32_v7 = vld [vmem:[%s3179_s3 + $0x8] sm:$0xff] }
   0x3   :  { %v2447_v8 = vpack.c.bf16 %v30_v5, %v29_v2  ;;  %v2606_v9 = vpack.i.bf16 %v32_v7, %v31_v6  ;;  %v33_v10 = vld [vmem:[%s3179_s3 + $0x10] sm:$0xff]  ;;  %v34_v11 = vld [vmem:[%s3179_s3 + $0x18] sm:$0xff]  ;;  %v41_v12 = vld [vmem:[%s3176_s0] sm:$0xff]  ;;  %v2601_v13 = vpack.i.bf16 %v30_v5, %v29_v2 }
   0x4   :  { %2597 = vrot.lane.b32.xlu0 %v2596_v3, %s2705_s18  ;;  %2444 = vmatprep.subr.bf16.mxu0 %v2443_v4  ;;  %v2611_v14 = vpack.i.bf16 %v34_v11, %v33_v10  ;;  %v2788_v15 = vld [vmem:[%s3176_s0 + $0x20] sm:$0xff] }
   0x5   :  { %2607 = vrot.lane.b32.xlu1 %v2606_v9, %s2705_s18  ;;  %2446 = vmatpush3.bf16.msra.mxu0 %v2443_v4 }
   0x6   :  { %2448 = vmatprep.subr.bf16.mxu0 %v2447_v8  ;;  %2194 = vmatprep.mubr.msk.f32.mxu0 %vm53_vm0, %v41_v12 }
   0x7   :  { %12 = vsyncpa [#allocation3], 0  ;;  %2579 = vmatprep.subr.bf16.mxu1 %v2443_v4  ;;  %2200 = vmatprep.mubr.msk.f32.mxu1 %vm53_vm0, %v2788_v15  ;;  %v2793_v16 = vpack.c.bf16 %v32_v7, %v31_v6  ;;  %v42_v17 = vld [vmem:[%s3176_s0 + $0x8] sm:$0xff]  ;;  %v2706_v18 = vmov 0.0|0.0   ;;  %v43_v19 = vld [vmem:[%s3176_s0 + $0x10] sm:$0xff]  ;;  %v2806_v21 = vpack.c.bf16 %v34_v11, %v33_v10  ;;  %vm2707_vm1 = vmmov 0  }
   0x8   :  { %2602 = vrot.lane.b32.xlu0 %v2601_v13, %s2705_s18  ;;  %2581 = vmatpush3.bf16.msra.mxu1 %v2443_v4  ;;  %v46_v20 = vld [vmem:[%s3176_s0 + $0x28] sm:$0xff]  ;;  %v44_v22 = vld [vmem:[%s3176_s0 + $0x18] sm:$0xff]  ;;  %v47_v23 = vld [vmem:[%s3176_s0 + $0x30] sm:$0xff]  ;;  %v2708_v25 = vmov 0.0   ;;  %s2710_s12 = smov 32   ;;  %vm1678_vm2 = vcmask 7168  }
   0x9   :  { %2612 = vrot.lane.b32.xlu1 %v2611_v14, %s2705_s18  ;;  %2450 = vmatpush3.bf16.msra.mxu0 %v2447_v8  ;;  %v48_v24 = vld [vmem:[%s3176_s0 + $0x38] sm:$0xff]  ;;  %v304_v26 = vld [vmem:[%s3177_s1] sm:$0xff]  ;;  %s2709_s1 = smov 96   ;;  %vm1680_vm3 = vcmask 15360   ;;  %vm1682_vm4 = vcmask 23552   ;;  %vm1684_vm5 = vcmask 31744  }
   0xa   :  { %2459 = vmatprep.subr.bf16.mxu0 %v2706_v18  ;;  %2580 = vmatprep.subr.bf16.mxu1 %v2447_v8  ;;  %v2840_v27 = vld [vmem:[%s3180_s4 + $0x1] ss:$0 sm:$0xff]  ;;  %v2017_v44 = vld [vmem:[%s3180_s4] ss:$0 sm:$0xff]  ;;  %vm1686_vm6 = vcmask 39936   ;;  %vm1688_vm7 = vcmask 48128  }
   0xb   :  { %vm1914_vm8 = vcmask 523264   ;;  %vm1988_vm9 = vcmask 64512  }
   0xc   :  { %2195 = vmatmul.mubr.msk.f32.vlgmr.msra.gmra.mrb[0].mxu0 %vm53_vm0, %v42_v17  ;;  %2582 = vmatpush3.bf16.msra.mxu1 %v2447_v8 }
   0xd   :  { %2461 = vmatpush3.bf16.msra.mxu0 %v2793_v16  ;;  %2197 = vmatprep.mubr.msk.f32.mxu0 %vm53_vm0, %v43_v19 }
   0xe   :  { %2462 = vmatprep.subr.bf16.mxu0 %v2706_v18  ;;  %402 = vrot.lane.b32.xlu0 %v2840_v27, %s2709_s1 }
   0xf   :  { %2201 = vmatmul.mubr.msk.f32.vlgmr.msra.gmra.mrb[0].mxu1 %vm53_vm0, %v46_v20 }
  0x10   :  { %2198 = vmatmul.mubr.msk.f32.gmra.mrb[2].mxu0 %vm53_vm0, %v44_v22  ;;  %2203 = vmatprep.mubr.msk.f32.mxu1 %vm53_vm0, %v47_v23 }
  0x11   :  { %2464 = vmatpush3.bf16.msra.mxu0 %v2806_v21  ;;  %2234 = vmatprep.mubr.msk.f32.mxu0 %vm2707_vm1, %v2708_v25 }
  0x12   :  { %2471 = vmatprep.subr.bf16.mxu0 %v2706_v18  ;;  %484 = vrot.lane.b32.xlu0 %v304_v26, %s2710_s12 }
  0x13   :  { %2204 = vmatmul.mubr.msk.f32.gmra.mrb[2].mxu1 %vm53_vm0, %v48_v24 }
  0x14   :  { %2235 = vmatmul.mubr.msk.f32.vlgmr.msra.gmra.mrb[4].mxu0 %vm53_vm0, %v304_v26  ;;  %2214 = vmatprep.mubr.msk.f32.mxu1 %vm53_vm0, %v41_v12 }
  0x15   :  { %2473 = vmatpush3.bf16.msra.mxu0 %v2793_v16  ;;  %2256 = vmatprep.mubr.msk.f32.mxu0 %vm2707_vm1, %v2708_v25 }
  0x16   :  { %2474 = vmatprep.subr.bf16.mxu0 %v2706_v18 }
  0x19   :  { %2476 = vmatpush3.bf16.msra.mxu0 %v2806_v21 }
  0x1a   :  { %2483 = vmatprep.subr.bf16.mxu0 %v2706_v18 }
  0x76   :  { %v2598_v28 = vpop.permute.xlu0 %2597 }
  0x77   :  { %v2600_v29 = vunpack.i.h.bf16 %v2598_v28  ;;  %v2599_v30 = vunpack.i.l.bf16 %v2598_v28  ;;  %v2608_v31 = vpop.permute.xlu1 %2607 }
  0x78   :  { %v2610_v36 = vunpack.i.h.bf16 %v2608_v31  ;;  %v2609_v37 = vunpack.i.l.bf16 %v2608_v31 }
  0x79   :  { %v2451_v32 = vpack.c.bf16 %v2600_v29, %v2599_v30 }
  0x7a   :  { %v2603_v33 = vpop.permute.xlu0 %2602  ;;  %v2847_v40 = vpack.c.bf16 %v2610_v36, %v2609_v37 }
  0x7b   :  { %v2605_v34 = vunpack.i.h.bf16 %v2603_v33  ;;  %v2604_v35 = vunpack.i.l.bf16 %v2603_v33  ;;  %2452 = vmatprep.subr.bf16.mxu1 %v2451_v32  ;;  %v2613_v39 = vpop.permute.xlu1 %2612 }
  0x7c   :  { %2454 = vmatpush3.bf16.msra.mxu1 %v2451_v32  ;;  %v2615_v41 = vunpack.i.h.bf16 %v2613_v39  ;;  %v2614_v42 = vunpack.i.l.bf16 %v2613_v39 }
  0x7d   :  { %v2455_v38 = vpack.c.bf16 %v2605_v34, %v2604_v35 }
  0x7e   :  { %v2853_v43 = vpack.c.bf16 %v2615_v41, %v2614_v42 }
  0x7f   :  { %2456 = vmatprep.subr.bf16.mxu1 %v2455_v38 }
  0x80   :  { %2458 = vmatpush3.bf16.msra.mxu1 %v2455_v38  ;;  %v2902_v11 = vpop.permute.xlu0 %402 }
  0x81   :  { %2465 = vmatprep.subr.bf16.mxu1 %v2706_v18 }
  0x83   :  { %2215 = vmatmul.mubr.msk.f32.vlgmr.msra.gmra.mrb[4].mxu1 %vm53_vm0, %v42_v17 }
  0x84   :  { %2467 = vmatpush3.bf16.msra.mxu1 %v2847_v40  ;;  %2217 = vmatprep.mubr.msk.f32.mxu1 %vm53_vm0, %v43_v19 }
  0x85   :  { %2468 = vmatprep.subr.bf16.mxu1 %v2706_v18 }
  0x87   :  { %2218 = vmatmul.mubr.msk.f32.gmra.mrb[6].mxu1 %vm53_vm0, %v44_v22 }
  0x88   :  { %2220 = vmatprep.mubr.msk.f32.mxu1 %vm53_vm0, %v2788_v15  ;;  %2470 = vmatpush3.bf16.msra.mxu1 %v2853_v43 }
  0x89   :  { %2477 = vmatprep.subr.bf16.mxu1 %v2706_v18 }
  0x8b   :  { %2221 = vmatmul.mubr.msk.f32.gmra.mrb[8].mxu1 %vm53_vm0, %v46_v20 }
  0x8c   :  { %2223 = vmatprep.mubr.msk.f32.mxu1 %vm53_vm0, %v47_v23  ;;  %v485_v23 = vpop.permute.xlu0 %484 }
  0x8f   :  { %2224 = vmatmul.mubr.msk.f32.gmra.mrb[10].mxu1 %vm53_vm0, %v48_v24 }
  0x90   :  { %2245 = vmatprep.mubr.msk.f32.mxu1 %vm2707_vm1, %v2708_v25 }
  0x93   :  { %2246 = vmatmul.mubr.msk.f32.vlgmr.msra.gmra.mrb[12].mxu1 %vm53_vm0, %v304_v26 }
  0x94   :  { %2479 = vmatpush3.bf16.msra.mxu1 %v2847_v40  ;;  %2267 = vmatprep.mubr.msk.f32.mxu1 %vm2707_vm1, %v2708_v25 }
  0x95   :  { %2480 = vmatprep.subr.bf16.mxu1 %v2706_v18 }
  0x98   :  { %2482 = vmatpush3.bf16.msra.mxu1 %v2853_v43 }
  0x99   :  { %2489 = vmatprep.subr.bf16.mxu1 %v2706_v18 }
  0xdf   :  { %v2196_v45 = vpop.f32.mrb[0].mxu0 }
  0xe0   :  { %v2876_v46 = vadd.f32 %v2196_v45, %v2017_v44  ;;  %v144_v47 = vpop.f32.mrb[1].mxu0 }
  0xe1   :  { %v145_v52 = vadd.f32 %v2017_v44, %v144_v47 }
  0xe2   :  { %v2202_v48 = vpop.f32.mrb[0].mxu1 }
  0xe3   :  { %v2199_v49 = vpop.f32.mrb[2].mxu0  ;;  %v2878_v50 = vadd.f32 %v2202_v48, %v2017_v44  ;;  %v164_v51 = vpop.f32.mrb[1].mxu1 }
  0xe4   :  { %v2880_v53 = vadd.f32 %v2199_v49, %v2017_v44  ;;  %v154_v54 = vpop.f32.mrb[3].mxu0  ;;  %v2882_v55 = vadd.f32 %v2017_v44, %v164_v51 }
  0xe5   :  { %v2884_v56 = vadd.f32 %v2017_v44, %v154_v54 }
  0xe6   :  { %v2205_v57 = vpop.f32.mrb[2].mxu1 }
  0xe7   :  { %v374_v58 = vpop.f32.mrb[4].mxu0  ;;  %v2886_v59 = vadd.f32 %v2205_v57, %v2017_v44  ;;  %v174_v60 = vpop.f32.mrb[3].mxu1 }
  0xe8   :  { %v378_v61 = vadd.f32 %v374_v58, %v145_v52  ;;  %v2236_v62 = vpop.f32.mrb[5].mxu0  ;;  %v2888_v63 = vadd.f32 %v2017_v44, %v174_v60 }
  0xea   :  { %v2035_v0 = vmul.f32 -1.442695, %v378_v61 }
  0xec   :  { %2623 = vpow2.f32 %v2035_v0 }
  0xf6   :  { %v2624_v2 = vpop.eup %2623 }
  0xf7   :  { %v382_v4 = vadd.f32 1.0, %v2624_v2 }
  0xf9   :  { %2625 = vrcp.f32 %v382_v4 }
 0x103   :  { %v2626_v15 = vpop.eup %2625 }
 0x104   :  { %v478_v24 = vsub.f32 1.0, %v2626_v15  ;;  %v487_v28 = vmul.f32 %v2626_v15, %v485_v23 }
 0x156   :  { %v2216_v1 = vpop.f32.mrb[4].mxu1 }
 0x157   :  { %v265_v3 = vpop.f32.mrb[5].mxu1  ;;  %v271_v44 = vadd.f32 %v2216_v1, %v2840_v27 }
 0x158   :  { %v266_v17 = vadd.f32 %v2840_v27, %v265_v3 }
 0x15a   :  { %v2890_v5 = vpop.f32.mrb[6].mxu1 }
 0x15b   :  { %v2892_v6 = vpop.f32.mrb[7].mxu1 }
 0x15e   :  { %v2894_v7 = vpop.f32.mrb[8].mxu1 }
 0x15f   :  { %v2896_v8 = vpop.f32.mrb[9].mxu1 }
 0x162   :  { %v2898_v9 = vpop.f32.mrb[10].mxu1 }
 0x163   :  { %v2900_v10 = vpop.f32.mrb[11].mxu1 }
 0x166   :  { %v471_v12 = vpop.f32.mrb[12].mxu1 }
 0x167   :  { %v472_v13 = vadd.f32 %v471_v12, %v2902_v11  ;;  %v2247_v14 = vpop.f32.mrb[13].mxu1 }
 0x169   :  { %v475_v19 = vmul.f32 %v2626_v15, %v472_v13  ;;  %v276_v13 = vadd.f32 %v2840_v27, %v2892_v6 }
 0x16b   :  { %v476_v20 = vadd.f32 %v475_v19, %v266_v17 }
 0x16d   :  { %2627 = vtanh.f32 %v476_v20 }
 0x177   :  { %v2628_v22 = vpop.eup %2627 }
 0x178   :  { %480 = vrot.lane.b32.xlu1 %v2628_v22, %s2710_s12 }
 0x1ea   :  { %v481_v26 = vpop.permute.xlu1 %480 }
 0x1eb   :  { %v483_v29 = vmul.f32 %v481_v26, %v478_v24 }
 0x1ed   :  { %v2907_v30 = vadd.f32 %v487_v28, %v483_v29 }
 0x1ef   :  { %490 = vrot.lane.b32.xlu1 %v2907_v30, %s2709_s1 }
 0x261   :  { %v491_v31 = vpop.permute.xlu1 %490 }
 0x262   :  { %2257 = vmatmul.mubr.msk.f32.vlgmr.msra.gmra.mrb[6].mxu0 %vm53_vm0, %v491_v31  ;;  %2268 = vmatmul.mubr.msk.f32.vlgmr.msra.gmra.mrb[14].mxu1 %vm53_vm0, %v491_v31 }
 0x263   :  { %2491 = vmatpush3.bf16.msra.mxu1 %v2847_v40  ;;  %2485 = vmatpush3.bf16.msra.mxu0 %v2793_v16 }
 0x264   :  { %2492 = vmatprep.subr.bf16.mxu1 %v2706_v18  ;;  %2486 = vmatprep.subr.bf16.mxu0 %v2706_v18 }
 0x265   :  { %2278 = vmatprep.mubr.msk.f32.mxu0 %vm2707_vm1, %v2708_v25  ;;  %2289 = vmatprep.mubr.msk.f32.mxu1 %vm2707_vm1, %v2708_v25 }
 0x267   :  { %2494 = vmatpush3.bf16.msra.mxu1 %v2853_v43  ;;  %2488 = vmatpush3.bf16.msra.mxu0 %v2806_v21 }
 0x268   :  { %2501 = vmatprep.subr.bf16.mxu1 %v2706_v18  ;;  %2495 = vmatprep.subr.bf16.mxu0 %v2706_v18 }
 0x335   :  { %v560_v32 = vpop.f32.mrb[6].mxu0  ;;  %v637_v33 = vpop.f32.mrb[14].mxu1 }
 0x336   :  { %v564_v34 = vadd.f32 %v560_v32, %v2876_v46  ;;  %v2258_v35 = vpop.f32.mrb[7].mxu0  ;;  %v2269_v36 = vpop.f32.mrb[15].mxu1  ;;  %v638_v41 = vadd.f32 %v637_v33, %v2902_v11 }
 0x338   :  { %v2038_v37 = vmul.f32 -1.442695, %v564_v34 }
 0x33a   :  { %2629 = vpow2.f32 %v2038_v37  ;;  %v281_v37 = vadd.f32 %v2890_v5, %v2840_v27 }
 0x344   :  { %v2630_v38 = vpop.eup %2629 }
 0x345   :  { %v568_v39 = vadd.f32 1.0, %v2630_v38 }
 0x347   :  { %2631 = vrcp.f32 %v568_v39 }
 0x351   :  { %v2632_v42 = vpop.eup %2631 }
 0x352   :  { %v641_v45 = vmul.f32 %v2632_v42, %v638_v41  ;;  %v644_v49 = vsub.f32 1.0, %v2632_v42  ;;  %v650_v51 = vmul.f32 %v2632_v42, %v2907_v30 }
 0x354   :  { %v642_v47 = vadd.f32 %v641_v45, %v271_v44 }
 0x356   :  { %2633 = vtanh.f32 %v642_v47 }
 0x360   :  { %v2634_v48 = vpop.eup %2633 }
 0x361   :  { %646 = vrot.lane.b32.xlu0 %v2634_v48, %s2710_s12 }
 0x3d3   :  { %v647_v46 = vpop.permute.xlu0 %646 }
 0x3d4   :  { %v649_v52 = vmul.f32 %v647_v46, %v644_v49 }
 0x3d6   :  { %v2930_v54 = vadd.f32 %v650_v51, %v649_v52 }
 0x3d8   :  { %653 = vrot.lane.b32.xlu1 %v2930_v54, %s2709_s1 }
 0x44a   :  { %v654_v57 = vpop.permute.xlu1 %653 }
 0x44b   :  { %2279 = vmatmul.mubr.msk.f32.vlgmr.msra.gmra.mrb[8].mxu0 %vm53_vm0, %v654_v57  ;;  %2290 = vmatmul.mubr.msk.f32.vlgmr.msra.gmra.mrb[16].mxu1 %vm53_vm0, %v654_v57 }
 0x44c   :  { %2503 = vmatpush3.bf16.msra.mxu1 %v2847_v40  ;;  %2497 = vmatpush3.bf16.msra.mxu0 %v2793_v16 }
 0x44d   :  { %2504 = vmatprep.subr.bf16.mxu1 %v2706_v18  ;;  %2498 = vmatprep.subr.bf16.mxu0 %v2706_v18 }
 0x44e   :  { %2300 = vmatprep.mubr.msk.f32.mxu0 %vm2707_vm1, %v2708_v25  ;;  %2311 = vmatprep.mubr.msk.f32.mxu1 %vm2707_vm1, %v2708_v25 }
 0x450   :  { %2506 = vmatpush3.bf16.msra.mxu1 %v2853_v43  ;;  %2500 = vmatpush3.bf16.msra.mxu0 %v2806_v21 }
 0x451   :  { %2513 = vmatprep.subr.bf16.mxu1 %v2706_v18  ;;  %2507 = vmatprep.subr.bf16.mxu0 %v2706_v18 }
 0x51e   :  { %v723_v58 = vpop.f32.mrb[8].mxu0  ;;  %v800_v60 = vpop.f32.mrb[16].mxu1 }
 0x51f   :  { %v727_v61 = vadd.f32 %v723_v58, %v2884_v56  ;;  %v2280_v62 = vpop.f32.mrb[9].mxu0  ;;  %v2291_v0 = vpop.f32.mrb[17].mxu1  ;;  %v801_v4 = vadd.f32 %v800_v60, %v2902_v11 }
 0x520   :  { %v286_v0 = vadd.f32 %v2840_v27, %v2896_v8 }
 0x521   :  { %v2041_v1 = vmul.f32 -1.442695, %v727_v61 }
 0x523   :  { %2635 = vpow2.f32 %v2041_v1 }
 0x52d   :  { %v2636_v2 = vpop.eup %2635 }
 0x52e   :  { %v731_v3 = vadd.f32 1.0, %v2636_v2 }
 0x530   :  { %2637 = vrcp.f32 %v731_v3 }
 0x53a   :  { %v2638_v12 = vpop.eup %2637 }
 0x53b   :  { %v804_v14 = vmul.f32 %v2638_v12, %v801_v4  ;;  %v807_v56 = vsub.f32 1.0, %v2638_v12  ;;  %v813_v20 = vmul.f32 %v2638_v12, %v2930_v54 }
 0x53d   :  { %v805_v15 = vadd.f32 %v804_v14, %v276_v13 }
 0x53f   :  { %2639 = vtanh.f32 %v805_v15 }
 0x549   :  { %v2640_v17 = vpop.eup %2639 }
 0x54a   :  { %809 = vrot.lane.b32.xlu0 %v2640_v17, %s2710_s12 }
 0x5bc   :  { %v810_v19 = vpop.permute.xlu0 %809 }
 0x5bd   :  { %v812_v22 = vmul.f32 %v810_v19, %v807_v56 }
 0x5bf   :  { %v2954_v23 = vadd.f32 %v813_v20, %v812_v22 }
 0x5c1   :  { %816 = vrot.lane.b32.xlu1 %v2954_v23, %s2709_s1 }
 0x633   :  { %v817_v24 = vpop.permute.xlu1 %816 }
 0x634   :  { %2301 = vmatmul.mubr.msk.f32.vlgmr.msra.gmra.mrb[10].mxu0 %vm53_vm0, %v817_v24  ;;  %2312 = vmatmul.mubr.msk.f32.vlgmr.msra.gmra.mrb[18].mxu1 %vm53_vm0, %v817_v24 }
 0x635   :  { %2515 = vmatpush3.bf16.msra.mxu1 %v2847_v40  ;;  %2509 = vmatpush3.bf16.msra.mxu0 %v2793_v16 }
 0x636   :  { %2516 = vmatprep.subr.bf16.mxu1 %v2706_v18  ;;  %2510 = vmatprep.subr.bf16.mxu0 %v2706_v18 }
 0x637   :  { %2322 = vmatprep.mubr.msk.f32.mxu0 %vm2707_vm1, %v2708_v25  ;;  %2333 = vmatprep.mubr.msk.f32.mxu1 %vm2707_vm1, %v2708_v25 }
 0x639   :  { %2518 = vmatpush3.bf16.msra.mxu1 %v2853_v43  ;;  %2512 = vmatpush3.bf16.msra.mxu0 %v2806_v21 }
 0x63a   :  { %2525 = vmatprep.subr.bf16.mxu1 %v2706_v18  ;;  %2519 = vmatprep.subr.bf16.mxu0 %v2706_v18 }
 0x707   :  { %v886_v6 = vpop.f32.mrb[10].mxu0  ;;  %v963_v26 = vpop.f32.mrb[18].mxu1 }
 0x708   :  { %v890_v28 = vadd.f32 %v886_v6, %v2880_v53  ;;  %v2302_v29 = vpop.f32.mrb[11].mxu0  ;;  %v2313_v31 = vpop.f32.mrb[19].mxu1  ;;  %v964_v35 = vadd.f32 %v963_v26, %v2902_v11 }
 0x709   :  { %v291_v29 = vadd.f32 %v2894_v7, %v2840_v27 }
 0x70a   :  { %v2044_v32 = vmul.f32 -1.442695, %v890_v28 }
 0x70c   :  { %2641 = vpow2.f32 %v2044_v32 }
 0x716   :  { %v2642_v33 = vpop.eup %2641 }
 0x717   :  { %v894_v34 = vadd.f32 1.0, %v2642_v33 }
 0x719   :  { %2643 = vrcp.f32 %v894_v34 }
 0x723   :  { %v2644_v36 = vpop.eup %2643 }
 0x724   :  { %v967_v38 = vmul.f32 %v2644_v36, %v964_v35  ;;  %v970_v53 = vsub.f32 1.0, %v2644_v36  ;;  %v976_v44 = vmul.f32 %v2644_v36, %v2954_v23 }
 0x726   :  { %v968_v39 = vadd.f32 %v967_v38, %v281_v37 }
 0x728   :  { %2645 = vtanh.f32 %v968_v39 }
 0x732   :  { %v2646_v41 = vpop.eup %2645 }
 0x733   :  { %972 = vrot.lane.b32.xlu0 %v2646_v41, %s2710_s12 }
 0x7a5   :  { %v973_v42 = vpop.permute.xlu0 %972 }
 0x7a6   :  { %v975_v45 = vmul.f32 %v973_v42, %v970_v53 }
 0x7a8   :  { %v2978_v47 = vadd.f32 %v976_v44, %v975_v45 }
 0x7aa   :  { %979 = vrot.lane.b32.xlu1 %v2978_v47, %s2709_s1 }
 0x81c   :  { %v980_v48 = vpop.permute.xlu1 %979 }
 0x81d   :  { %2323 = vmatmul.mubr.msk.f32.vlgmr.msra.gmra.mrb[12].mxu0 %vm53_vm0, %v980_v48  ;;  %2334 = vmatmul.mubr.msk.f32.vlgmr.msra.gmra.mrb[20].mxu1 %vm53_vm0, %v980_v48 }
 0x81e   :  { %2527 = vmatpush3.bf16.msra.mxu1 %v2847_v40  ;;  %2521 = vmatpush3.bf16.msra.mxu0 %v2793_v16 }
 0x81f   :  { %2528 = vmatprep.subr.bf16.mxu1 %v2706_v18  ;;  %2522 = vmatprep.subr.bf16.mxu0 %v2706_v18 }
 0x820   :  { %2344 = vmatprep.mubr.msk.f32.mxu0 %vm2707_vm1, %v2708_v25  ;;  %2355 = vmatprep.mubr.msk.f32.mxu1 %vm2707_vm1, %v2708_v25 }
 0x822   :  { %2530 = vmatpush3.bf16.msra.mxu1 %v2853_v43  ;;  %2524 = vmatpush3.bf16.msra.mxu0 %v2806_v21 }
 0x823   :  { %2537 = vmatprep.subr.bf16.mxu1 %v2706_v18  ;;  %2531 = vmatprep.subr.bf16.mxu0 %v2706_v18 }
 0x8f0   :  { %v1049_v5 = vpop.f32.mrb[12].mxu0  ;;  %v1126_v49 = vpop.f32.mrb[20].mxu1 }
 0x8f1   :  { %v1053_v46 = vadd.f32 %v1049_v5, %v2882_v55  ;;  %v2324_v51 = vpop.f32.mrb[13].mxu0  ;;  %v2335_v52 = vpop.f32.mrb[21].mxu1  ;;  %v1127_v61 = vadd.f32 %v1126_v49, %v2902_v11 }
 0x8f3   :  { %v2047_v57 = vmul.f32 -1.442695, %v1053_v46 }
 0x8f5   :  { %2647 = vpow2.f32 %v2047_v57 }
 0x8ff   :  { %v2648_v58 = vpop.eup %2647 }
 0x900   :  { %v1057_v60 = vadd.f32 1.0, %v2648_v58 }
 0x902   :  { %2649 = vrcp.f32 %v1057_v60 }
 0x90c   :  { %v2650_v62 = vpop.eup %2649 }
 0x90d   :  { %v1130_v1 = vmul.f32 %v2650_v62, %v1127_v61  ;;  %v1133_v55 = vsub.f32 1.0, %v2650_v62  ;;  %v1139_v12 = vmul.f32 %v2650_v62, %v2978_v47 }
 0x90f   :  { %v1131_v2 = vadd.f32 %v1130_v1, %v286_v0 }
 0x911   :  { %2651 = vtanh.f32 %v1131_v2 }
 0x91b   :  { %v2652_v3 = vpop.eup %2651 }
 0x91c   :  { %1135 = vrot.lane.b32.xlu0 %v2652_v3, %s2710_s12 }
 0x98e   :  { %v1136_v4 = vpop.permute.xlu0 %1135 }
 0x98f   :  { %v1138_v13 = vmul.f32 %v1136_v4, %v1133_v55 }
 0x991   :  { %v3002_v14 = vadd.f32 %v1139_v12, %v1138_v13  ;;  %v301_v12 = vadd.f32 %v2898_v9, %v2840_v27 }
 0x993   :  { %1142 = vrot.lane.b32.xlu1 %v3002_v14, %s2709_s1 }
 0xa05   :  { %v1143_v15 = vpop.permute.xlu1 %1142 }
 0xa06   :  { %2345 = vmatmul.mubr.msk.f32.vlgmr.msra.gmra.mrb[14].mxu0 %vm53_vm0, %v1143_v15  ;;  %2356 = vmatmul.mubr.msk.f32.vlgmr.msra.gmra.mrb[22].mxu1 %vm53_vm0, %v1143_v15 }
 0xa07   :  { %2539 = vmatpush3.bf16.msra.mxu1 %v2847_v40  ;;  %2533 = vmatpush3.bf16.msra.mxu0 %v2793_v16 }
 0xa08   :  { %2540 = vmatprep.subr.bf16.mxu1 %v2706_v18  ;;  %2534 = vmatprep.subr.bf16.mxu0 %v2706_v18 }
 0xa09   :  { %2366 = vmatprep.mubr.msk.f32.mxu0 %vm2707_vm1, %v2708_v25  ;;  %2377 = vmatprep.mubr.msk.f32.mxu1 %vm2707_vm1, %v2708_v25 }
 0xa0b   :  { %2542 = vmatpush3.bf16.msra.mxu1 %v2853_v43  ;;  %2536 = vmatpush3.bf16.msra.mxu0 %v2806_v21 }
 0xa0c   :  { %2549 = vmatprep.subr.bf16.mxu1 %v2706_v18  ;;  %2543 = vmatprep.subr.bf16.mxu0 %v2706_v18 }
 0xad9   :  { %v1212_v8 = vpop.f32.mrb[14].mxu0  ;;  %v1289_v17 = vpop.f32.mrb[22].mxu1 }
 0xada   :  { %v1216_v56 = vadd.f32 %v1212_v8, %v2878_v50  ;;  %v2346_v19 = vpop.f32.mrb[15].mxu0  ;;  %v2357_v20 = vpop.f32.mrb[23].mxu1  ;;  %v1290_v26 = vadd.f32 %v1289_v17, %v2902_v11 }
 0xadc   :  { %v2050_v22 = vmul.f32 -1.442695, %v1216_v56 }
 0xade   :  { %2653 = vpow2.f32 %v2050_v22 }
 0xae8   :  { %v2654_v24 = vpop.eup %2653 }
 0xae9   :  { %v1220_v6 = vadd.f32 1.0, %v2654_v24 }
 0xaeb   :  { %2655 = vrcp.f32 %v1220_v6 }
 0xaf5   :  { %v2656_v28 = vpop.eup %2655 }
 0xaf6   :  { %v1293_v31 = vmul.f32 %v2656_v28, %v1290_v26  ;;  %v1296_v50 = vsub.f32 1.0, %v2656_v28  ;;  %v1302_v35 = vmul.f32 %v2656_v28, %v3002_v14 }
 0xaf8   :  { %v1294_v32 = vadd.f32 %v1293_v31, %v291_v29 }
 0xafa   :  { %2657 = vtanh.f32 %v1294_v32 }
 0xb04   :  { %v2658_v33 = vpop.eup %2657 }
 0xb05   :  { %1298 = vrot.lane.b32.xlu0 %v2658_v33, %s2710_s12 }
 0xb77   :  { %v1299_v34 = vpop.permute.xlu0 %1298 }
 0xb78   :  { %v1301_v36 = vmul.f32 %v1299_v34, %v1296_v50 }
 0xb7a   :  { %v3026_v37 = vadd.f32 %v1302_v35, %v1301_v36 }
 0xb7c   :  { %1305 = vrot.lane.b32.xlu1 %v3026_v37, %s2709_s1 }
 0xbee   :  { %v1306_v38 = vpop.permute.xlu1 %1305 }
 0xbef   :  { %2367 = vmatmul.mubr.msk.f32.vlgmr.msra.gmra.mrb[16].mxu0 %vm53_vm0, %v1306_v38  ;;  %2378 = vmatmul.mubr.msk.f32.vlgmr.msra.gmra.mrb[24].mxu1 %vm53_vm0, %v1306_v38 }
 0xbf0   :  { %2551 = vmatpush3.bf16.msra.mxu1 %v2847_v40  ;;  %2545 = vmatpush3.bf16.msra.mxu0 %v2793_v16 }
 0xbf1   :  { %2552 = vmatprep.subr.bf16.mxu1 %v2706_v18  ;;  %2546 = vmatprep.subr.bf16.mxu0 %v2706_v18 }
 0xbf2   :  { %2388 = vmatprep.mubr.msk.f32.mxu0 %vm2707_vm1, %v2708_v25  ;;  %2399 = vmatprep.mubr.msk.f32.mxu1 %vm2707_vm1, %v2708_v25 }
 0xbf4   :  { %2554 = vmatpush3.bf16.msra.mxu1 %v2853_v43  ;;  %2548 = vmatpush3.bf16.msra.mxu0 %v2806_v21  ;;  %v296_v21 = vadd.f32 %v2840_v27, %v2900_v10 }
 0xbf5   :  { %2555 = vmatprep.subr.bf16.mxu0 %v2706_v18  ;;  %2561 = vmatprep.subr.bf16.mxu1 %v2706_v18 }
 0xcc2   :  { %v1375_v40 = vpop.f32.mrb[16].mxu0  ;;  %v1452_v16 = vpop.f32.mrb[24].mxu1 }
 0xcc3   :  { %v1379_v7 = vadd.f32 %v1375_v40, %v2888_v63  ;;  %v2368_v39 = vpop.f32.mrb[17].mxu0  ;;  %v2379_v41 = vpop.f32.mrb[25].mxu1  ;;  %v1453_v45 = vadd.f32 %v1452_v16, %v2902_v11 }
 0xcc5   :  { %v2053_v53 = vmul.f32 -1.442695, %v1379_v7 }
 0xcc7   :  { %2659 = vpow2.f32 %v2053_v53 }
 0xcd1   :  { %v2660_v42 = vpop.eup %2659 }
 0xcd2   :  { %v1383_v44 = vadd.f32 1.0, %v2660_v42 }
 0xcd4   :  { %2661 = vrcp.f32 %v1383_v44 }
 0xcde   :  { %v2662_v43 = vpop.eup %2661 }
 0xcdf   :  { %v1456_v48 = vmul.f32 %v2662_v43, %v1453_v45  ;;  %v1459_v63 = vsub.f32 1.0, %v2662_v43  ;;  %v1465_v51 = vmul.f32 %v2662_v43, %v3026_v37 }
 0xce1   :  { %v1457_v5 = vadd.f32 %v1456_v48, %v296_v21 }
 0xce3   :  { %2663 = vtanh.f32 %v1457_v5 }
 0xced   :  { %v2664_v49 = vpop.eup %2663 }
 0xcee   :  { %1461 = vrot.lane.b32.xlu0 %v2664_v49, %s2710_s12 }
 0xd60   :  { %v1462_v46 = vpop.permute.xlu0 %1461 }
 0xd61   :  { %v1464_v52 = vmul.f32 %v1462_v46, %v1459_v63 }
 0xd63   :  { %v1466_v57 = vadd.f32 %v1465_v51, %v1464_v52 }
 0xd65   :  { %1468 = vrot.lane.b32.xlu1 %v1466_v57, %s2709_s1 }
 0xdd7   :  { %v1469_v58 = vpop.permute.xlu1 %1468 }
 0xdd8   :  { %2389 = vmatmul.mubr.msk.f32.vlgmr.msra.gmra.mrb[18].mxu0 %vm53_vm0, %v1469_v58  ;;  %2400 = vmatmul.mubr.msk.f32.vlgmr.msra.gmra.mrb[26].mxu1 %vm53_vm0, %v1469_v58  ;;  %v2712_v58 = vmov 0  }
 0xdd9   :  { %2410 = vmatprep.mubr.msk.f32.mxu0 %vm2707_vm1, %v2708_v25  ;;  %2421 = vmatprep.mubr.msk.f32.mxu1 %vm2707_vm1, %v2708_v25 }
 0xdda   :  { %2616 = vset.pattern.permute.xlu0 %v2712_v58 }
 0xeab   :  { %v1538_v10 = vpop.f32.mrb[18].mxu0  ;;  %v1615_v60 = vpop.f32.mrb[26].mxu1 }
 0xeac   :  { %v1542_v61 = vadd.f32 %v1538_v10, %v2886_v59  ;;  %v2390_v62 = vpop.f32.mrb[19].mxu0  ;;  %v2401_v0 = vpop.f32.mrb[27].mxu1  ;;  %v1616_v55 = vadd.f32 %v1615_v60, %v2902_v11 }
 0xead   :  { %v2713_v62 = vmov 2   ;;  %v2714_v0 = vmov 5  }
 0xeae   :  { %v2056_v1 = vmul.f32 -1.442695, %v1542_v61 }
 0xeb0   :  { %2665 = vpow2.f32 %v2056_v1  ;;  %v2715_v1 = vmov 3  }
 0xeba   :  { %v2666_v2 = vpop.eup %2665 }
 0xebb   :  { %v1546_v3 = vadd.f32 1.0, %v2666_v2  ;;  %v2716_v2 = vmov 4  }
 0xebd   :  { %2667 = vrcp.f32 %v1546_v3  ;;  %v1740_v3 = vld [vmem:[%s3181_s5 + $0x20] sm:$0xff] }
 0xec7   :  { %v2668_v4 = vpop.eup %2667 }
 0xec8   :  { %v1619_v13 = vmul.f32 %v2668_v4, %v1616_v55  ;;  %v1622_v59 = vsub.f32 1.0, %v2668_v4  ;;  %v1628_v56 = vmul.f32 %v2668_v4, %v1466_v57  ;;  %v2711_v57 = vmov 1   ;;  %v1741_v55 = vld [vmem:[%s3181_s5 + $0x28] sm:$0xff] }
 0xec9   :  { %2617 = vset.pattern.permute.xlu1 %v2711_v57  ;;  %v2556_v4 = vpack.c.bf16 %v1741_v55, %v1740_v3 }
 0xeca   :  { %v1620_v15 = vadd.f32 %v1619_v13, %v301_v12  ;;  %v1742_v12 = vld [vmem:[%s3181_s5 + $0x30] sm:$0xff]  ;;  %v1743_v13 = vld [vmem:[%s3181_s5 + $0x38] sm:$0xff] }
 0xecb   :  { %2557 = vmatpush3.bf16.msra.mxu0 %v2556_v4 }
 0xecc   :  { %2669 = vtanh.f32 %v1620_v15  ;;  %2558 = vmatprep.subr.bf16.mxu0 %v2706_v18  ;;  %v2559_v15 = vpack.c.bf16 %v1743_v13, %v1742_v12 }
 0xecf   :  { %2560 = vmatpush3.bf16.msra.mxu0 %v2559_v15 }
 0xed0   :  { %2567 = vmatprep.subr.bf16.mxu0 %v2706_v18 }
 0xed6   :  { %v2670_v8 = vpop.eup %2669 }
 0xed7   :  { %1624 = vrot.lane.b32.xlu0 %v2670_v8, %s2710_s12  ;;  %v1736_v8 = vld [vmem:[%s3181_s5] sm:$0xff] }
 0xf49   :  { %v1625_v17 = vpop.permute.xlu0 %1624 }
 0xf4a   :  { %v1627_v19 = vmul.f32 %v1625_v17, %v1622_v59  ;;  %v1737_v59 = vld [vmem:[%s3181_s5 + $0x8] sm:$0xff]  ;;  %v1738_v17 = vld [vmem:[%s3181_s5 + $0x10] sm:$0xff] }
 0xf4c   :  { %v3062_v20 = vadd.f32 %v1628_v56, %v1627_v19  ;;  %v2562_v56 = vpack.c.bf16 %v1737_v59, %v1736_v8  ;;  %v1739_v19 = vld [vmem:[%s3181_s5 + $0x18] sm:$0xff] }
 0xf4e   :  { %v1638_v22 = vmul.f32 %v3062_v20, %v2930_v54  ;;  %v1630_v11 = vmul.f32 %v3062_v20, %v2907_v30  ;;  %v1654_v27 = vmul.f32 %v3062_v20, %v2978_v47  ;;  %v1646_v9 = vmul.f32 %v3062_v20, %v2954_v23  ;;  %2563 = vmatpush3.bf16.msra.mxu1 %v2562_v56 }
 0xf4f   :  { %v1670_v24 = vmul.f32 %v3062_v20, %v3026_v37  ;;  %v1662_v6 = vmul.f32 %v3062_v20, %v3002_v14  ;;  %2564 = vmatprep.subr.bf16.mxu1 %v2706_v18 }
 0xf50   :  { %1640 = vrot.lane.b32.xlu0 %v1638_v22, %s2709_s1  ;;  %1632 = vrot.lane.b32.xlu1 %v1630_v11, %s2709_s1  ;;  %v2565_v22 = vpack.c.bf16 %v1739_v19, %v1738_v17 }
 0xf52   :  { %2566 = vmatpush3.bf16.msra.mxu1 %v2565_v22 }
 0xf54   :  { %1656 = vrot.lane.b32.xlu0 %v1654_v27, %s2709_s1  ;;  %1648 = vrot.lane.b32.xlu1 %v1646_v9, %s2709_s1 }
 0xf58   :  { %1672 = vrot.lane.b32.xlu0 %v1670_v24, %s2709_s1  ;;  %1664 = vrot.lane.b32.xlu1 %v1662_v6, %s2709_s1 }
 0xfc2   :  { %v1641_v26 = vpop.permute.xlu0 %1640  ;;  %v1633_v28 = vpop.permute.xlu1 %1632 }
 0xfc3   :  { %v1643_v29 = vsel %vm53_vm0, %v1641_v26, 0.0  ;;  %v1635_v31 = vsel %vm53_vm0, %v1633_v28, 0.0 }
 0xfc4   :  { %1644 = vadd.xlane.f32.xlu0 %v1643_v29  ;;  %1636 = vadd.xlane.f32.xlu1 %v1635_v31 }
 0xfc6   :  { %v1657_v32 = vpop.permute.xlu0 %1656  ;;  %v1649_v33 = vpop.permute.xlu1 %1648 }
 0xfc7   :  { %v1659_v50 = vsel %vm53_vm0, %v1657_v32, 0.0  ;;  %v1651_v34 = vsel %vm53_vm0, %v1649_v33, 0.0 }
 0xfc8   :  { %1660 = vadd.xlane.f32.xlu1 %v1659_v50  ;;  %1652 = vadd.xlane.f32.xlu0 %v1651_v34 }
 0xfca   :  { %v1673_v35 = vpop.permute.xlu0 %1672  ;;  %v1665_v36 = vpop.permute.xlu1 %1664 }
 0xfcb   :  { %v1675_v38 = vsel %vm53_vm0, %v1673_v35, 0.0  ;;  %v1667_v40 = vsel %vm53_vm0, %v1665_v36, 0.0 }
 0xfcc   :  { %1676 = vadd.xlane.f32.xlu1 %v1675_v38  ;;  %1668 = vadd.xlane.f32.xlu0 %v1667_v40 }
0x1051   :  { %v1645_v16 = vpop.xlane.xlu0 %1644  ;;  %v1637_v7 = vpop.xlane.xlu1 %1636 }
0x1052   :  { %v1679_v39 = vsel %vm1678_vm2, %v1637_v7, %v1645_v16  ;;  %v1905_v16 = vld [vmem:[%s3182_s6 + $0x20] sm:$0xff]  ;;  %v1906_v7 = vld [vmem:[%s3182_s6 + $0x28] sm:$0xff] }
0x1055   :  { %v1653_v41 = vpop.xlane.xlu0 %1652  ;;  %v1661_v53 = vpop.xlane.xlu1 %1660 }
0x1056   :  { %v1681_v42 = vsel %vm1680_vm3, %v1679_v39, %v1653_v41  ;;  %v2574_v39 = vpack.c.bf16 %v1906_v7, %v1905_v16  ;;  %v1907_v41 = vld [vmem:[%s3182_s6 + $0x30] sm:$0xff] }
0x1057   :  { %v1683_v44 = vsel %vm1682_vm4, %v1681_v42, %v1661_v53  ;;  %v1908_v53 = vld [vmem:[%s3182_s6 + $0x38] sm:$0xff] }
0x1058   :  { %v2577_v42 = vpack.c.bf16 %v1908_v53, %v1907_v41 }
0x1059   :  { %v1669_v45 = vpop.xlane.xlu0 %1668  ;;  %v1677_v43 = vpop.xlane.xlu1 %1676 }
0x105a   :  { %v1685_v21 = vsel %vm1684_vm5, %v1683_v44, %v1669_v45 }
0x105b   :  { %v1687_v48 = vsel %vm1686_vm6, %v1685_v21, %v1677_v43  ;;  %v2060_v43 = vld [vmem:[%s3181_s5 + $0x40] ss:$0 sm:$0xff]  ;;  %s2717_s5 = smov [#allocation2]  }
0x105c   :  { %v1689_v5 = vsel %vm1688_vm7, %v1687_v48, -inf }
0x105d   :  { %1690 = vmax.xlane.f32.xlu0 %v1689_v5 }
0x10ea   :  { %v1691_v49 = vpop.xlane.xlu0 %1690 }
0x10eb   :  { %v1692_v63 = vsub.f32 %v1687_v48, %v1691_v49 }
0x10ed   :  { %v1693_v46 = vmul.f32 1.442695, %v1692_v63 }
0x10ef   :  { %2671 = vpow2.f32 %v1693_v46  ;;  %v2061_v46 = vld [vmem:[%s3182_s6 + $0x40] ss:$0 sm:$0xff] }
0x10f9   :  { %v2672_v51 = vpop.eup %2671 }
0x10fa   :  { %v1695_v52 = vsel %vm1688_vm7, %v2672_v51, 0.0 }
0x10fb   :  { %1696 = vadd.xlane.f32.xlu1 %v1695_v52 }
0x1188   :  { %v1697_v10 = vpop.xlane.xlu1 %1696 }
0x1189   :  { %2673 = vrcp.f32 %v1697_v10 }
0x1193   :  { %v2674_v60 = vpop.eup %2673 }
0x1194   :  { %v1699_v61 = vmul.f32 %v2674_v60, %v2672_v51 }
0x1196   :  { %1707 = vperm.xlu1 %2617, %v1699_v61   ;;  %1702 = vperm.xlu0 %2616, %v1699_v61  }
0x119a   :  { %2618 = vset.pattern.permute.xlu1 %v2713_v62  ;;  %2622 = vset.pattern.permute.xlu0 %v2714_v0 }
0x119b   :  { %1713 = vperm.xlu1 %2618, %v1699_v61  }
0x119f   :  { %2619 = vset.pattern.permute.xlu1 %v2715_v1 }
0x11a0   :  { %1719 = vperm.xlu1 %2619, %v1699_v61  }
0x11a4   :  { %2620 = vset.pattern.permute.xlu1 %v2716_v2 }
0x11a5   :  { %1725 = vperm.xlu1 %2620, %v1699_v61  }
0x11a9   :  { %2621 = vset.pattern.permute.xlu1 %v2714_v0 }
0x11aa   :  { %1731 = vperm.xlu1 %2621, %v1699_v61  }
0x11ae   :  { %1746 = vrot.lane.b32.xlu1 %v3062_v20, %s2709_s1 }
0x1215   :  { %v1708_v20 = vpop.permute.xlu1 %1707  ;;  %v1703_v27 = vpop.permute.xlu0 %1702 }
0x1216   :  { %v1710_v24 = vmul.f32 %v1708_v20, %v2930_v54  ;;  %v1705_v6 = vmul.f32 %v1703_v27, %v2907_v30  ;;  %v1901_v54 = vld [vmem:[%s3182_s6] sm:$0xff] }
0x1218   :  { %v1711_v28 = vadd.f32 %v1710_v24, %v1705_v6 }
0x121a   :  { %v1714_v11 = vpop.permute.xlu1 %1713 }
0x121b   :  { %v1716_v26 = vmul.f32 %v1714_v11, %v2954_v23  ;;  %v1902_v23 = vld [vmem:[%s3182_s6 + $0x8] sm:$0xff] }
0x121d   :  { %v1717_v32 = vadd.f32 %v1716_v26, %v1711_v28 }
0x121f   :  { %v1720_v9 = vpop.permute.xlu1 %1719 }
0x1220   :  { %v1722_v29 = vmul.f32 %v1720_v9, %v2978_v47  ;;  %v2568_v47 = vpack.c.bf16 %v1902_v23, %v1901_v54 }
0x1222   :  { %v1723_v50 = vadd.f32 %v1722_v29, %v1717_v32 }
0x1224   :  { %v1726_v31 = vpop.permute.xlu1 %1725 }
0x1225   :  { %v1728_v33 = vmul.f32 %v1726_v31, %v3002_v14  ;;  %v1903_v14 = vld [vmem:[%s3182_s6 + $0x10] sm:$0xff] }
0x1227   :  { %v1729_v35 = vadd.f32 %v1728_v33, %v1723_v50 }
0x1229   :  { %v1732_v34 = vpop.permute.xlu1 %1731 }
0x122a   :  { %v1734_v36 = vmul.f32 %v1732_v34, %v3026_v37 }
0x122c   :  { %v1735_v38 = vadd.f32 %v1734_v36, %v1729_v35 }
0x122d   :  { %v1747_v40 = vpop.permute.xlu1 %1746 }
0x122e   :  { %2411 = vmatmul.mubr.msk.f32.vlgmr.msra.gmra.mrb[20].mxu0 %vm53_vm0, %v1747_v40  ;;  %1821 = vrot.lane.b32.xlu1 %v1735_v38, %s2709_s1 }
0x122f   :  { %2440 = vmatprep.mubr.msk.f32.mxu0 %vm2707_vm1, %v2708_v25  ;;  %2569 = vmatpush3.bf16.msra.mxu0 %v2568_v47  ;;  %v1904_v25 = vld [vmem:[%s3182_s6 + $0x18] sm:$0xff]  ;;  %s2008_s6 = sshll.u32 %s2717_s5, 4  ;;  %s2009_s6 = int_to_ptr.vmem [resolvable:$true] %s2008_s6 }
0x1230   :  { %2570 = vmatprep.subr.bf16.mxu0 %v2706_v18  ;;  %v2571_v37 = vpack.c.bf16 %v1904_v25, %v1903_v14  ;;  %s2681_s3 = scalar_lea.vmem %s2009_s6, 128  ;;  %p2686_p1 = scmp.lt.s32.totalorder %s2009_s6, %s2009_s6 }
0x1231   :  { %p2682_p0 = scmp.ne.s32.totalorder %s2009_s6, %s2681_s3  ;;  %p2687_p2 = scmp.lt.s32.totalorder %s2681_s3, %s2681_s3 }
0x1233   :  { %2572 = vmatpush3.bf16.msra.mxu0 %v2571_v37  ;;  %p2688_p3 = por %p2687_p2, %p2686_p1 }
0x1234   :  { %2573 = vmatprep.subr.bf16.mxu0 %v2706_v18 }
0x1235   :  { %p2689_p4 = pnand %p2688_p3, %p2682_p0 }
0x1237   :  { %2575 = vmatpush3.bf16.msra.mxu0 %v2574_v39 }
0x1238   :  { %2576 = vmatprep.subr.bf16.mxu0 %v2706_v18 }
0x123b   :  { %2578 = vmatpush3.bf16.msra.mxu0 %v2577_v42 }
0x12a0   :  { %v1822_v30 = vpop.permute.xlu1 %1821 }
0x12a1   :  { %2422 = vmatmul.mubr.msk.f32.vlgmr.msra.gmra.mrb[28].mxu1 %vm53_vm0, %v1822_v30 }
0x1301   :  { %v1816_v44 = vpop.f32.mrb[20].mxu0 }
0x1302   :  { %v2412_v45 = vpop.f32.mrb[21].mxu0 }
0x1374   :  { %v1891_v21 = vpop.f32.mrb[28].mxu1 }
0x1375   :  { %v1892_v48 = vadd.f32 %v1891_v21, %v1816_v44  ;;  %v2423_v5 = vpop.f32.mrb[29].mxu1 }
0x1377   :  { %v1899_v49 = vadd.f32 %v2060_v43, %v1892_v48 }
0x1379   :  { %2675 = vtanh.f32 %v1899_v49 }
0x1383   :  { %v2676_v63 = vpop.eup %2675 }
0x1384   :  { %2441 = vmatmul.mubr.msk.f32.vlgmr.msra.gmra.mrb[22].mxu0 %vm1914_vm8, %v2676_v63 }
0x1457   :  { %v1984_v18 = vpop.f32.mrb[22].mxu0 }
0x1458   :  { %v1985_v51 = vadd.f32 %v2061_v46, %v1984_v18  ;;  %v2442_v52 = vpop.f32.mrb[23].mxu0 }
0x145a   :  { %v1989_v57 = vsel %vm1988_vm9, %v1985_v51, -inf }
0x145b   :  { %1990 = vmax.xlane.f32.xlu1 %v1989_v57 }
0x14e8   :  { %v1991_v58 = vpop.xlane.xlu1 %1990 }
0x14e9   :  { %v1992_v10 = vsub.f32 %v1985_v51, %v1991_v58 }
0x14eb   :  { %v1993_v60 = vmul.f32 1.442695, %v1992_v10 }
0x14ed   :  { %2677 = vpow2.f32 %v1993_v60 }
0x14f7   :  { %v2678_v61 = vpop.eup %2677 }
0x14f8   :  { %v1995_v62 = vsel %vm1988_vm9, %v2678_v61, 0.0 }
0x14f9   :  { %1996 = vadd.xlane.f32.xlu0 %v1995_v62 }
0x1586   :  { %v1997_v0 = vpop.xlane.xlu0 %1996 }
0x1587   :  { %2679 = vlog2.f32 %v1997_v0 }
0x1591   :  { %v2680_v1 = vpop.eup %2679 }
0x1592   :  { %v1999_v2 = vmul.f32 0.6931472, %v2680_v1 }
0x1594   :  { %v2000_v3 = vsub.f32 %v1992_v10, %v1999_v2 }
0x1596   :  { %2001 = vst.msk [vmem:[#allocation2] sm:$0xff] %vm1988_vm9, %v2000_v3 }
0x1597   :  { %2692 = shalt.err (!%p2689_p4)
}
0x1598   :  { %s2693_s23 = scalar_lea.hbm %s3183_s7, 128 }
0x1599   :  { %p2694_p5 = scmp.ne.s32.totalorder %s3183_s7, %s2693_s23  ;;  %p2697_p6 = scmp.lt.u32.totalorder %s2693_s23, %s3183_s7 }
0x159b   :  { %p2699_p7 = pnand %p2697_p6, %p2694_p5 }
0x159d   :  { %2702 = shalt.err (!%p2699_p7)
}
0x159e   :  { %2011 = dma.vmem_to_hbm [thread:$0]  %s2009_s6, 128, %s3183_s7, [#allocation3]  }
0x159f   :  { %2703 = dma.done.wait [#allocation3], 128  }
0x15a0   :  { %2704 = vsyncadd [#allocation3], 4294967168 }
0x15a1   :  { %2015 = vsyncpa [#allocation3], 1 }

</bundles_post_ra>
